<compile_context>
chip_gen: v7x
topology: tpu7x:2x2x1
jax: 0.10.0
libtpu: 0.0.40
codegen_flags: <defaults>
</compile_context>

<pallas_src>
import jax
import jax.numpy as jnp
from jax.experimental import pallas as pl
from jax.experimental.pallas import tpu as pltpu

BN_EPS = 1e-5


def _round_up(x, m):
    return (x + m - 1) // m * m


def _mlp_head_kernel(
    x_ref,                 # (TB, 1024) bf16
    wfc_ref, bfc_ref,      # fc: (1024, 512) bf16, (1, 512) f32
    w1_ref, b1_ref,        # BN1-folded Linear(512, 256): bf16 / f32
    w2_ref, b2_ref,        # BN2-folded Linear(256, 128): bf16 / f32
    w3_ref, b3_ref,        # Linear(128, 1) zero-padded to (128, 128): bf16 / f32
    o_ref,                 # (TB, 128) f32 (column 0 is the real output)
):
    x = x_ref[...]

    # fc: Linear(1024 -> 512)
    h = jnp.dot(x, wfc_ref[...], preferred_element_type=jnp.float32) + bfc_ref[...]

    # Flatten is a no-op on (B, 512).
    # Linear(512 -> 256) with BatchNorm1d(256) (eval) folded in, then ReLU.
    h = jnp.dot(h.astype(jnp.bfloat16), w1_ref[...],
                preferred_element_type=jnp.float32) + b1_ref[...]
    h = jnp.maximum(h, 0.0)
    # Dropout(0.5): identity in eval mode.

    # Linear(256 -> 128) with BatchNorm1d(128) (eval) folded in, then ReLU.
    h = jnp.dot(h.astype(jnp.bfloat16), w2_ref[...],
                preferred_element_type=jnp.float32) + b2_ref[...]
    h = jnp.maximum(h, 0.0)
    # Dropout(0.5): identity in eval mode.

    # Linear(128 -> 1), padded to 128 output lanes for a lane-dense store.
    out = jnp.dot(h.astype(jnp.bfloat16), w3_ref[...],
                  preferred_element_type=jnp.float32) + b3_ref[...]
    o_ref[...] = out


def prepare_params(p):
    """Fold eval-mode BN into the preceding Linears, cast weights to bf16, pad final layer."""
    s1 = p["g1"] / jnp.sqrt(p["v1"] + BN_EPS)                  # (1, 256)
    w1 = p["w1"] * s1                                          # (512, 256)
    b1 = (p["b1"] - p["m1"]) * s1 + p["be1"]                   # (1, 256)

    s2 = p["g2"] / jnp.sqrt(p["v2"] + BN_EPS)                  # (1, 128)
    w2 = p["w2"] * s2                                          # (256, 128)
    b2 = (p["b2"] - p["m2"]) * s2 + p["be2"]                   # (1, 128)

    w3 = jnp.pad(p["w3"], ((0, 0), (0, 127)))                  # (128, 128)
    b3 = jnp.pad(p["b3"], ((0, 0), (0, 127)))                  # (1, 128)

    return dict(
        wfc=p["wfc"].astype(jnp.bfloat16), bfc=p["bfc"].astype(jnp.float32),
        w1=w1.astype(jnp.bfloat16), b1=b1.astype(jnp.float32),
        w2=w2.astype(jnp.bfloat16), b2=b2.astype(jnp.float32),
        w3=w3.astype(jnp.bfloat16), b3=b3.astype(jnp.float32),
    )


def custom_model_forward(features, params, *, tile_b=256):
    """features: (B, 1024) — output of the frozen base_model. Returns (B, 1) f32."""
    B, F = features.shape
    assert F == 1024

    pp = prepare_params(params)

    # Clamp the batch tile to the (8-aligned) batch so tiny batches are a single grid step.
    tile_b = max(8, min(_round_up(tile_b, 8), _round_up(B, 8)))
    B_pad = _round_up(B, tile_b)
    if B_pad != B:
        features = jnp.pad(features, ((0, B_pad - B), (0, 0)))
    x_bf16 = features.astype(jnp.bfloat16)

    def full_spec(shape):
        # Parameter blocks: whole array, block-invariant across the batch grid.
        return pl.BlockSpec(shape, lambda i: (0,) * len(shape))

    in_specs = [
        pl.BlockSpec((tile_b, 1024), lambda i: (i, 0)),         # x tile
        full_spec((1024, 512)), full_spec((1, 512)),            # fc
        full_spec((512, 256)), full_spec((1, 256)),             # linear1 (BN1 folded)
        full_spec((256, 128)), full_spec((1, 128)),             # linear2 (BN2 folded)
        full_spec((128, 128)), full_spec((1, 128)),             # linear3 (lane-padded)
    ]

    out = pl.pallas_call(
        _mlp_head_kernel,
        out_shape=jax.ShapeDtypeStruct((B_pad, 128), jnp.float32),
        grid_spec=pltpu.PrefetchScalarGridSpec(
            num_scalar_prefetch=0,
            grid=(B_pad // tile_b,),
            in_specs=in_specs,
            out_specs=pl.BlockSpec((tile_b, 128), lambda i: (i, 0)),
        ),
        compiler_params=pltpu.CompilerParams(
            dimension_semantics=("parallel",),
            vmem_limit_bytes=32 * 1024 * 1024,
        ),
    )(
        x_bf16,
        pp["wfc"], pp["bfc"],
        pp["w1"], pp["b1"],
        pp["w2"], pp["b2"],
        pp["w3"], pp["b3"],
    )

    # Real output lives in lane 0 of the lane-dense slab; drop batch padding.
    return out[:B, 0:1]


def init_params(key):
    ks = jax.random.split(key, 8)

    def lin(k, fan_in, fan_out):
        # PyTorch nn.Linear default init: U(-1/sqrt(fan_in), 1/sqrt(fan_in)).
        bound = 1.0 / jnp.sqrt(fan_in)
        kw, kb = jax.random.split(k)
        w = jax.random.uniform(kw, (fan_in, fan_out), jnp.float32, -bound, bound)
        b = jax.random.uniform(kb, (1, fan_out), jnp.float32, -bound, bound)
        return w, b

    wfc, bfc = lin(ks[0], 1024, 512)
    w1, b1 = lin(ks[1], 512, 256)
    w2, b2 = lin(ks[2], 256, 128)
    w3, b3 = lin(ks[3], 128, 1)

    def bn(kg, km, n):
        gamma = jnp.ones((1, n), jnp.float32)
        beta = jnp.zeros((1, n), jnp.float32)
        # Deterministic non-trivial running stats so BN actually does something.
        mean = 0.1 * jax.random.normal(kg, (1, n), jnp.float32)
        var = 1.0 + 0.1 * jax.random.uniform(km, (1, n), jnp.float32)
        return gamma, beta, mean, var

    g1, be1, m1, v1 = bn(ks[4], ks[5], 256)
    g2, be2, m2, v2 = bn(ks[6], ks[7], 128)

    return dict(
        wfc=wfc, bfc=bfc,
        w1=w1, b1=b1, g1=g1, be1=be1, m1=m1, v1=v1,
        w2=w2, b2=b2, g2=g2, be2=be2, m2=m2, v2=v2,
        w3=w3, b3=b3,
    )


def reference_forward(x, p):
    # Full-precision, unfolded eval-mode semantics of the PyTorch module.
    h = x @ p["wfc"] + p["bfc"]
    h = h @ p["w1"] + p["b1"]
    h = (h - p["m1"]) / jnp.sqrt(p["v1"] + BN_EPS) * p["g1"] + p["be1"]
    h = jnp.maximum(h, 0.0)
    h = h @ p["w2"] + p["b2"]
    h = (h - p["m2"]) / jnp.sqrt(p["v2"] + BN_EPS) * p["g2"] + p["be2"]
    h = jnp.maximum(h, 0.0)
    return h @ p["w3"] + p["b3"]


if __name__ == "__main__":
    key = jax.random.PRNGKey(0)
    kp, kx = jax.random.split(key)

    params = init_params(kp)

    # Small batch of base_model features (B, 1024).
    B = 8
    x = jax.random.normal(kx, (B, 1024), jnp.float32)

    out = custom_model_forward(x, params)
    out = jax.block_until_ready(out)

    ref = reference_forward(x, params)
    assert out.shape == (B, 1)
    # bf16 weights/activations with f32 accumulation vs full f32 reference:
    # loose-but-safe tolerance for this small classifier head.
    assert jnp.allclose(out, ref, atol=2e-2, rtol=2e-2)

    print("KERNEL_OK")
</pallas_src>

<mosaic_0001>
module attributes {stable_mosaic.version = 11 : i64} {
  func.func @_mlp_head_kernel(%arg0: i32, %arg1: memref<8x1024xbf16, #tpu.memory_space<vmem>>, %arg2: memref<1024x512xbf16, #tpu.memory_space<vmem>>, %arg3: memref<1x512xf32, #tpu.memory_space<vmem>>, %arg4: memref<512x256xbf16, #tpu.memory_space<vmem>>, %arg5: memref<1x256xf32, #tpu.memory_space<vmem>>, %arg6: memref<256x128xbf16, #tpu.memory_space<vmem>>, %arg7: memref<1x128xf32, #tpu.memory_space<vmem>>, %arg8: memref<128x128xbf16, #tpu.memory_space<vmem>>, %arg9: memref<1x128xf32, #tpu.memory_space<vmem>>, %arg10: memref<8x128xf32, #tpu.memory_space<vmem>>) attributes {dimension_semantics = [#tpu.dimension_semantics<parallel>], iteration_bounds = array<i64: 1>, scalar_prefetch = 0 : i64, scratch_operands = 0 : i64, tpu.core_type = #tpu.core_type<tc>, window_params = [{transform_indices = @transform_0, window_bounds = array<i64: 8, 1024>}, {pipeline_mode = #tpu.pipeline_mode<synchronous>, transform_indices = @transform_1, window_bounds = array<i64: 1024, 512>}, {pipeline_mode = #tpu.pipeline_mode<synchronous>, transform_indices = @transform_2, window_bounds = array<i64: 1, 512>}, {pipeline_mode = #tpu.pipeline_mode<synchronous>, transform_indices = @transform_3, window_bounds = array<i64: 512, 256>}, {pipeline_mode = #tpu.pipeline_mode<synchronous>, transform_indices = @transform_4, window_bounds = array<i64: 1, 256>}, {pipeline_mode = #tpu.pipeline_mode<synchronous>, transform_indices = @transform_5, window_bounds = array<i64: 256, 128>}, {pipeline_mode = #tpu.pipeline_mode<synchronous>, transform_indices = @transform_6, window_bounds = array<i64: 1, 128>}, {pipeline_mode = #tpu.pipeline_mode<synchronous>, transform_indices = @transform_7, window_bounds = array<i64: 128, 128>}, {pipeline_mode = #tpu.pipeline_mode<synchronous>, transform_indices = @transform_8, window_bounds = array<i64: 1, 128>}, {transform_indices = @transform_9, window_bounds = array<i64: 8, 128>}]} {
    %c0 = arith.constant 0 : index
    %c0_0 = arith.constant 0 : index
    %0 = vector.load %arg1[%c0, %c0_0] : memref<8x1024xbf16, #tpu.memory_space<vmem>>, vector<8x1024xbf16>
    %c0_1 = arith.constant 0 : index
    %c0_2 = arith.constant 0 : index
    %1 = vector.load %arg2[%c0_1, %c0_2] : memref<1024x512xbf16, #tpu.memory_space<vmem>>, vector<1024x512xbf16>
    %cst = arith.constant dense<0.000000e+00> : vector<8x512xf32>
    %2 = tpu.matmul %0, %1, %cst {dimension_numbers = #tpu.dot_dimension_numbers<[1], [0], [0], [1], [0, 0, 1, 1], [], []>} : vector<8x1024xbf16>, vector<1024x512xbf16>, vector<8x512xf32> -> vector<8x512xf32>
    %c0_3 = arith.constant 0 : index
    %c0_4 = arith.constant 0 : index
    %3 = vector.load %arg3[%c0_3, %c0_4] : memref<1x512xf32, #tpu.memory_space<vmem>>, vector<1x512xf32>
    %4 = vector.broadcast %3 : vector<1x512xf32> to vector<8x512xf32>
    %5 = arith.addf %2, %4 : vector<8x512xf32>
    %6 = arith.truncf %5 : vector<8x512xf32> to vector<8x512xbf16>
    %c0_5 = arith.constant 0 : index
    %c0_6 = arith.constant 0 : index
    %7 = vector.load %arg4[%c0_5, %c0_6] : memref<512x256xbf16, #tpu.memory_space<vmem>>, vector<512x256xbf16>
    %cst_7 = arith.constant dense<0.000000e+00> : vector<8x256xf32>
    %8 = tpu.matmul %6, %7, %cst_7 {dimension_numbers = #tpu.dot_dimension_numbers<[1], [0], [0], [1], [0, 0, 1, 1], [], []>} : vector<8x512xbf16>, vector<512x256xbf16>, vector<8x256xf32> -> vector<8x256xf32>
    %c0_8 = arith.constant 0 : index
    %c0_9 = arith.constant 0 : index
    %9 = vector.load %arg5[%c0_8, %c0_9] : memref<1x256xf32, #tpu.memory_space<vmem>>, vector<1x256xf32>
    %10 = vector.broadcast %9 : vector<1x256xf32> to vector<8x256xf32>
    %11 = arith.addf %8, %10 : vector<8x256xf32>
    %cst_10 = arith.constant 0.000000e+00 : f32
    %12 = vector.broadcast %cst_10 : f32 to vector<8x256xf32>
    %13 = arith.maximumf %11, %12 : vector<8x256xf32>
    %14 = arith.truncf %13 : vector<8x256xf32> to vector<8x256xbf16>
    %c0_11 = arith.constant 0 : index
    %c0_12 = arith.constant 0 : index
    %15 = vector.load %arg6[%c0_11, %c0_12] : memref<256x128xbf16, #tpu.memory_space<vmem>>, vector<256x128xbf16>
    %cst_13 = arith.constant dense<0.000000e+00> : vector<8x128xf32>
    %16 = tpu.matmul %14, %15, %cst_13 {dimension_numbers = #tpu.dot_dimension_numbers<[1], [0], [0], [1], [0, 0, 1, 1], [], []>} : vector<8x256xbf16>, vector<256x128xbf16>, vector<8x128xf32> -> vector<8x128xf32>
    %c0_14 = arith.constant 0 : index
    %c0_15 = arith.constant 0 : index
    %17 = vector.load %arg7[%c0_14, %c0_15] : memref<1x128xf32, #tpu.memory_space<vmem>>, vector<1x128xf32>
    %18 = vector.broadcast %17 : vector<1x128xf32> to vector<8x128xf32>
    %19 = arith.addf %16, %18 : vector<8x128xf32>
    %cst_16 = arith.constant 0.000000e+00 : f32
    %20 = vector.broadcast %cst_16 : f32 to vector<8x128xf32>
    %21 = arith.maximumf %19, %20 : vector<8x128xf32>
    %22 = arith.truncf %21 : vector<8x128xf32> to vector<8x128xbf16>
    %c0_17 = arith.constant 0 : index
    %c0_18 = arith.constant 0 : index
    %23 = vector.load %arg8[%c0_17, %c0_18] : memref<128x128xbf16, #tpu.memory_space<vmem>>, vector<128x128xbf16>
    %cst_19 = arith.constant dense<0.000000e+00> : vector<8x128xf32>
    %24 = tpu.matmul %22, %23, %cst_19 {dimension_numbers = #tpu.dot_dimension_numbers<[1], [0], [0], [1], [0, 0, 1, 1], [], []>} : vector<8x128xbf16>, vector<128x128xbf16>, vector<8x128xf32> -> vector<8x128xf32>
    %c0_20 = arith.constant 0 : index
    %c0_21 = arith.constant 0 : index
    %25 = vector.load %arg9[%c0_20, %c0_21] : memref<1x128xf32, #tpu.memory_space<vmem>>, vector<1x128xf32>
    %26 = vector.broadcast %25 : vector<1x128xf32> to vector<8x128xf32>
    %27 = arith.addf %24, %26 : vector<8x128xf32>
    %c0_22 = arith.constant 0 : index
    %c0_23 = arith.constant 0 : index
    %28 = vector.load %arg10[%c0_22, %c0_23] : memref<8x128xf32, #tpu.memory_space<vmem>>, vector<8x128xf32>
    tpu.vector_store %arg10[%c0_22, %c0_23], %27 {strides = array<i32>} : memref<8x128xf32, #tpu.memory_space<vmem>>, vector<8x128xf32>,
    return
  }
  func.func @transform_0(%arg0: i32) -> (i32, i32) {
    %c0_i32 = arith.constant 0 : i32
    %c0_i32_0 = arith.constant 0 : i32
    return %arg0, %c0_i32 : i32, i32
  }
  func.func @transform_1(%arg0: i32) -> (i32, i32) {
    %c0_i32 = arith.constant 0 : i32
    %c0_i32_0 = arith.constant 0 : i32
    %c0_i32_1 = arith.constant 0 : i32
    return %c0_i32, %c0_i32_0 : i32, i32
  }
  func.func @transform_2(%arg0: i32) -> (i32, i32) {
    %c0_i32 = arith.constant 0 : i32
    %c0_i32_0 = arith.constant 0 : i32
    %c0_i32_1 = arith.constant 0 : i32
    return %c0_i32, %c0_i32_0 : i32, i32
  }
  func.func @transform_3(%arg0: i32) -> (i32, i32) {
    %c0_i32 = arith.constant 0 : i32
    %c0_i32_0 = arith.constant 0 : i32
    %c0_i32_1 = arith.constant 0 : i32
    return %c0_i32, %c0_i32_0 : i32, i32
  }
  func.func @transform_4(%arg0: i32) -> (i32, i32) {
    %c0_i32 = arith.constant 0 : i32
    %c0_i32_0 = arith.constant 0 : i32
    %c0_i32_1 = arith.constant 0 : i32
    return %c0_i32, %c0_i32_0 : i32, i32
  }
  func.func @transform_5(%arg0: i32) -> (i32, i32) {
    %c0_i32 = arith.constant 0 : i32
    %c0_i32_0 = arith.constant 0 : i32
    %c0_i32_1 = arith.constant 0 : i32
    return %c0_i32, %c0_i32_0 : i32, i32
  }
  func.func @transform_6(%arg0: i32) -> (i32, i32) {
    %c0_i32 = arith.constant 0 : i32
    %c0_i32_0 = arith.constant 0 : i32
    %c0_i32_1 = arith.constant 0 : i32
    return %c0_i32, %c0_i32_0 : i32, i32
  }
  func.func @transform_7(%arg0: i32) -> (i32, i32) {
    %c0_i32 = arith.constant 0 : i32
    %c0_i32_0 = arith.constant 0 : i32
    %c0_i32_1 = arith.constant 0 : i32
    return %c0_i32, %c0_i32_0 : i32, i32
  }
  func.func @transform_8(%arg0: i32) -> (i32, i32) {
    %c0_i32 = arith.constant 0 : i32
    %c0_i32_0 = arith.constant 0 : i32
    %c0_i32_1 = arith.constant 0 : i32
    return %c0_i32, %c0_i32_0 : i32, i32
  }
  func.func @transform_9(%arg0: i32) -> (i32, i32) {
    %c0_i32 = arith.constant 0 : i32
    %c0_i32_0 = arith.constant 0 : i32
    return %arg0, %c0_i32 : i32, i32
  }
}

</mosaic_0001>

<bundles_post_ra>
// kernel: tpu_custom_call.1
= control target key start
LH: loop header
LB: loop body
LE: loop exit
PB: predicated region body
PF: predicated region fallthrough
CT: control target
= control target key end

     0   :  { %14 = vsyncpa [#allocation3], 0  ;;  %s4117_s0 = inlined_call_operand.hbm [shape: bf16[8,1024], index: 0, kind: input, shape index: {}]   ;;  %s4118_s1 = inlined_call_operand.hbm [shape: bf16[1024,512], index: 1, kind: input, shape index: {}]   ;;  %s4119_s2 = inlined_call_operand.vmem [shape: f32[1,512], index: 2, kind: input, shape index: {}]   ;;  %s4120_s3 = inlined_call_operand.hbm [shape: bf16[512,256], index: 3, kind: input, shape index: {}]   ;;  %s4121_s4 = inlined_call_operand.vmem [shape: f32[1,256], index: 4, kind: input, shape index: {}]   ;;  %s4122_s5 = inlined_call_operand.hbm [shape: bf16[256,128], index: 5, kind: input, shape index: {}]   ;;  %s4123_s6 = inlined_call_operand.vmem [shape: f32[1,128], index: 6, kind: input, shape index: {}]   ;;  %s4124_s7 = inlined_call_operand.hbm [shape: bf16[128,128], index: 7, kind: input, shape index: {}]   ;;  %s4125_s8 = inlined_call_operand.vmem [shape: f32[1,128], index: 8, kind: input, shape index: {}]   ;;  %s4126_s9 = inlined_call_operand.hbm [shape: f32[8,128], index: 9, kind: output, shape index: {}]  }
   0x1   :  { %15 = vsyncpa [#allocation6], 0 }
   0x2   :  { %16 = vsyncpa [#allocation9], 0 }
   0x3   :  { %17 = vsyncpa [#allocation4], 0  ;;  %s3915_s30 = smov [#allocation5]   ;;  %s3775_s13 = scalar_lea.hbm %s4118_s1, 32768 }
   0x4   :  { %s33_s10 = sshll.u32 %s3915_s30, 4  ;;  %p3776_p0 = scmp.ne.s32.totalorder %s4118_s1, %s3775_s13  ;;  %s34_s10 = int_to_ptr.vmem [resolvable:$true] %s33_s10 }
   0x5   :  { %p3779_p1 = scmp.lt.u32.totalorder %s3775_s13, %s4118_s1 }
   0x7   :  { %p3781_p2 = pnand %p3779_p1, %p3776_p0 }
   0x9   :  { %3784 = shalt.err (!%p3781_p2)
}
   0xa   :  { %s3785_s18 = scalar_lea.vmem %s34_s10, 32768  ;;  %p3790_p4 = scmp.lt.s32.totalorder %s34_s10, %s34_s10 }
   0xb   :  { %p3786_p3 = scmp.ne.s32.totalorder %s34_s10, %s3785_s18  ;;  %p3791_p5 = scmp.lt.s32.totalorder %s3785_s18, %s3785_s18 }
   0xd   :  { %p3792_p6 = por %p3791_p5, %p3790_p4 }
   0xf   :  { %p3793_p7 = pnand %p3792_p6, %p3786_p3 }
  0x11   :  { %3796 = shalt.err (!%p3793_p7)
}
  0x12   :  { %s3916_s19 = smov 256   ;;  %s3917_s20 = smov 16  }
  0x13   :  { %39 = dma.hbm_to_vmem [thread:$0]  %s4118_s1, 32768, %s34_s10, [#allocation6], %s3916_s19, %s3916_s19, %s3917_s20  }
  0x14   :  { %s3918_s23 = smov [#allocation8]   ;;  %s3797_s27 = scalar_lea.hbm %s4122_s5, 2048 }
  0x15   :  { %s61_s24 = sshll.u32 %s3918_s23, 4  ;;  %p3798_p8 = scmp.ne.s32.totalorder %s4122_s5, %s3797_s27  ;;  %s62_s24 = int_to_ptr.vmem [resolvable:$true] %s61_s24 }
  0x16   :  { %p3801_p9 = scmp.lt.u32.totalorder %s3797_s27, %s4122_s5 }
  0x18   :  { %p3803_p10 = pnand %p3801_p9, %p3798_p8 }
  0x1a   :  { %3806 = shalt.err (!%p3803_p10)
}
  0x1b   :  { %s3807_s12 = scalar_lea.vmem %s62_s24, 2048  ;;  %p3812_p12 = scmp.lt.s32.totalorder %s62_s24, %s62_s24 }
  0x1c   :  { %p3808_p11 = scmp.ne.s32.totalorder %s62_s24, %s3807_s12  ;;  %p3813_p13 = scmp.lt.s32.totalorder %s3807_s12, %s3807_s12 }
  0x1e   :  { %p3814_p0 = por %p3813_p13, %p3812_p12 }
  0x20   :  { %p3815_p1 = pnand %p3814_p0, %p3808_p11 }
  0x22   :  { %3818 = shalt.err (!%p3815_p1)
}
  0x23   :  { %s3919_s1 = smov 64   ;;  %s3920_s10 = smov 4  }
  0x24   :  { %67 = dma.hbm_to_vmem [thread:$0]  %s4122_s5, 2048, %s62_s24, [#allocation9], %s3919_s1, %s3919_s1, %s3920_s10  }
  0x25   :  { %s3921_s15 = smov [#allocation2]   ;;  %s3922_s17 = smov [#allocation7]  }
  0x26   :  { %s24_s16 = sshll.u32 %s3921_s15, 4  ;;  %s47_s18 = sshll.u32 %s3922_s17, 4  ;;  %s25_s16 = int_to_ptr.vmem [resolvable:$true] %s24_s16  ;;  %s4006_s18 = int_to_ptr.vmem [resolvable:$true] %s47_s18 }
  0x27   :  { %s3819_s21 = scalar_lea.hbm %s4117_s0, 512 }
  0x28   :  { %p3820_p2 = scmp.ne.s32.totalorder %s4117_s0, %s3819_s21  ;;  %p3823_p3 = scmp.lt.u32.totalorder %s3819_s21, %s4117_s0 }
  0x2a   :  { %p3825_p4 = pnand %p3823_p3, %p3820_p2 }
  0x2c   :  { %3828 = shalt.err (!%p3825_p4)
}
  0x2d   :  { %s3829_s5 = scalar_lea.vmem %s25_s16, 512  ;;  %p3834_p6 = scmp.lt.s32.totalorder %s25_s16, %s25_s16 }
  0x2e   :  { %p3830_p5 = scmp.ne.s32.totalorder %s25_s16, %s3829_s5  ;;  %p3835_p7 = scmp.lt.s32.totalorder %s3829_s5, %s3829_s5 }
  0x30   :  { %p3836_p8 = por %p3835_p7, %p3834_p6 }
  0x32   :  { %p3837_p9 = pnand %p3836_p8, %p3830_p5 }
  0x34   :  { %3840 = shalt.err (!%p3837_p9)
}
  0x35   :  { %27 = dma.hbm_to_vmem [thread:$0]  %s4117_s0, 512, %s25_s16, [#allocation3]  }
  0x36   :  { %s3841_s30 = scalar_lea.hbm %s4120_s3, 8192 }
  0x37   :  { %p3842_p10 = scmp.ne.s32.totalorder %s4120_s3, %s3841_s30  ;;  %p3845_p11 = scmp.lt.u32.totalorder %s3841_s30, %s4120_s3 }
  0x39   :  { %p3847_p12 = pnand %p3845_p11, %p3842_p10 }
  0x3b   :  { %3850 = shalt.err (!%p3847_p12)
}
  0x3c   :  { %s3851_s15 = scalar_lea.vmem %s4006_s18, 8192  ;;  %p3856_p0 = scmp.lt.s32.totalorder %s4006_s18, %s4006_s18 }
  0x3d   :  { %p3852_p13 = scmp.ne.s32.totalorder %s4006_s18, %s3851_s15  ;;  %p3857_p1 = scmp.lt.s32.totalorder %s3851_s15, %s3851_s15 }
  0x3f   :  { %p3858_p2 = por %p3857_p1, %p3856_p0 }
  0x41   :  { %p3859_p3 = pnand %p3858_p2, %p3852_p13 }
  0x43   :  { %3862 = shalt.err (!%p3859_p3)
}
  0x44   :  { %s3923_s0 = smov 128   ;;  %s3924_s16 = smov 8  }
  0x45   :  { %53 = dma.hbm_to_vmem [thread:$0]  %s4120_s3, 8192, %s4006_s18, [#allocation6], %s3923_s0, %s3923_s0, %s3924_s16  }
  0x46   :  { %s3925_s20 = smov [#allocation10]   ;;  %s3863_s25 = scalar_lea.hbm %s4124_s7, 1024 }
  0x47   :  { %s75_s21 = sshll.u32 %s3925_s20, 4  ;;  %p3864_p4 = scmp.ne.s32.totalorder %s4124_s7, %s3863_s25  ;;  %s76_s21 = int_to_ptr.vmem [resolvable:$true] %s75_s21 }
  0x48   :  { %p3867_p5 = scmp.lt.u32.totalorder %s3863_s25, %s4124_s7 }
  0x4a   :  { %p3869_p6 = pnand %p3867_p5, %p3864_p4 }
  0x4c   :  { %3872 = shalt.err (!%p3869_p6)
}
  0x4d   :  { %s3873_s28 = scalar_lea.vmem %s76_s21, 1024  ;;  %p3878_p8 = scmp.lt.s32.totalorder %s76_s21, %s76_s21 }
  0x4e   :  { %p3874_p7 = scmp.ne.s32.totalorder %s76_s21, %s3873_s28  ;;  %p3879_p9 = scmp.lt.s32.totalorder %s3873_s28, %s3873_s28 }
  0x50   :  { %p3880_p10 = por %p3879_p9, %p3878_p8 }
  0x52   :  { %p3881_p11 = pnand %p3880_p10, %p3874_p7 }
  0x54   :  { %3884 = shalt.err (!%p3881_p11)
}
  0x55   :  { %81 = dma.hbm_to_vmem [thread:$0]  %s4124_s7, 1024, %s76_s21, [#allocation9], %s3919_s1, %s3919_s1, %s3920_s10  }
  0x56   :  { %3907 = dma.done.wait [#allocation3], 512  }
  0x57   :  { %3908 = vsyncadd [#allocation3], 4294966784 }
  0x58   :  { %3909 = dma.done.wait [#allocation6], 40960  }
  0x59   :  { %3910 = vsyncadd [#allocation6], 4294926336 }
  0x5a   :  { %3911 = dma.done.wait [#allocation9], 3072  }
  0x5b   :  { %3912 = vsyncadd [#allocation9], 4294964224  ;;  %v3263_v0 = vld [vmem:[#allocation5 + $0x4] ss:$16 sps:$4 sm:$0xff]   ;;  %v3265_v1 = vld [vmem:[#allocation5 + $0xc] ss:$16 sps:$4 sm:$0xff]  }
  0x5c   :  { %1690 = vmatprep.subr.bf16.mxu0 %v3263_v0  ;;  %v3267_v2 = vld [vmem:[#allocation5] ss:$16 sps:$4 sm:$0xff]   ;;  %v3268_v3 = vld [vmem:[#allocation5 + $0x8] ss:$16 sps:$4 sm:$0xff]   ;;  %1854 = vmatprep.subr.bf16.mxu1 %v3265_v1  ;;  %v3269_v4 = vld [vmem:[#allocation5 + $0x24] ss:$16 sps:$4 sm:$0xff]  }
  0x5d   :  { %1691 = vmatpush1.bf16.msra.mxu0 %v3267_v2  ;;  %1855 = vmatpush1.bf16.msra.mxu1 %v3268_v3  ;;  %v3271_v5 = vld [vmem:[#allocation5 + $0x2c] ss:$16 sps:$4 sm:$0xff]   ;;  %v3273_v6 = vld [vmem:[#allocation5 + $0x20] ss:$16 sps:$4 sm:$0xff]   ;;  %v3274_v7 = vld [vmem:[#allocation5 + $0x28] ss:$16 sps:$4 sm:$0xff]  }
  0x5e   :  { %1692 = vmatprep.subr.bf16.mxu0 %v3269_v4  ;;  %1856 = vmatprep.subr.bf16.mxu1 %v3271_v5  ;;  %v3275_v8 = vld [vmem:[#allocation5 + $0x44] ss:$16 sps:$4 sm:$0xff]   ;;  %v3277_v9 = vld [vmem:[#allocation5 + $0x4c] ss:$16 sps:$4 sm:$0xff]   ;;  %v3279_v10 = vld [vmem:[#allocation5 + $0x40] ss:$16 sps:$4 sm:$0xff]  }
  0x5f   :  { %v3280_v11 = vld [vmem:[#allocation5 + $0x48] ss:$16 sps:$4 sm:$0xff]   ;;  %v3281_v12 = vld [vmem:[#allocation5 + $0x64] ss:$16 sps:$4 sm:$0xff]   ;;  %v3283_v13 = vld [vmem:[#allocation5 + $0x6c] ss:$16 sps:$4 sm:$0xff]  }
  0x60   :  { %v3285_v14 = vld [vmem:[#allocation5 + $0x60] ss:$16 sps:$4 sm:$0xff]   ;;  %v3286_v15 = vld [vmem:[#allocation5 + $0x68] ss:$16 sps:$4 sm:$0xff]   ;;  %v3287_v16 = vld [vmem:[#allocation5 + $0x84] ss:$16 sps:$4 sm:$0xff]  }
  0x61   :  { %1693 = vmatpush1.bf16.msra.mxu0 %v3273_v6  ;;  %1857 = vmatpush1.bf16.msra.mxu1 %v3274_v7  ;;  %v3289_v17 = vld [vmem:[#allocation5 + $0x8c] ss:$16 sps:$4 sm:$0xff]   ;;  %v3291_v18 = vld [vmem:[#allocation5 + $0x80] ss:$16 sps:$4 sm:$0xff]   ;;  %v3292_v19 = vld [vmem:[#allocation5 + $0x88] ss:$16 sps:$4 sm:$0xff]  }
  0x62   :  { %1694 = vmatprep.subr.bf16.mxu0 %v3275_v8  ;;  %1858 = vmatprep.subr.bf16.mxu1 %v3277_v9  ;;  %v3293_v20 = vld [vmem:[#allocation5 + $0xa4] ss:$16 sps:$4 sm:$0xff]   ;;  %v3295_v21 = vld [vmem:[#allocation5 + $0xac] ss:$16 sps:$4 sm:$0xff]   ;;  %v3297_v22 = vld [vmem:[#allocation5 + $0xa0] ss:$16 sps:$4 sm:$0xff]  }
  0x63   :  { %v3298_v23 = vld [vmem:[#allocation5 + $0xa8] ss:$16 sps:$4 sm:$0xff]   ;;  %v3299_v24 = vld [vmem:[#allocation5 + $0xc4] ss:$16 sps:$4 sm:$0xff]   ;;  %v3301_v25 = vld [vmem:[#allocation5 + $0xcc] ss:$16 sps:$4 sm:$0xff]  }
  0x64   :  { %v3303_v26 = vld [vmem:[#allocation5 + $0xc0] ss:$16 sps:$4 sm:$0xff]   ;;  %v3304_v27 = vld [vmem:[#allocation5 + $0xc8] ss:$16 sps:$4 sm:$0xff]   ;;  %v3305_v28 = vld [vmem:[#allocation5 + $0xe4] ss:$16 sps:$4 sm:$0xff]  }
  0x65   :  { %1695 = vmatpush1.bf16.msra.mxu0 %v3279_v10  ;;  %1859 = vmatpush1.bf16.msra.mxu1 %v3280_v11  ;;  %v3307_v29 = vld [vmem:[#allocation5 + $0xec] ss:$16 sps:$4 sm:$0xff]   ;;  %v3309_v30 = vld [vmem:[#allocation5 + $0xe0] ss:$16 sps:$4 sm:$0xff]   ;;  %v3310_v31 = vld [vmem:[#allocation5 + $0xe8] ss:$16 sps:$4 sm:$0xff]  }
  0x66   :  { %1696 = vmatprep.subr.bf16.mxu0 %v3281_v12  ;;  %1860 = vmatprep.subr.bf16.mxu1 %v3283_v13  ;;  %v3311_v32 = vld [vmem:[#allocation5 + $0x104] ss:$16 sps:$4 sm:$0xff]   ;;  %v3313_v33 = vld [vmem:[#allocation5 + $0x10c] ss:$16 sps:$4 sm:$0xff]   ;;  %v3315_v34 = vld [vmem:[#allocation5 + $0x100] ss:$16 sps:$4 sm:$0xff]  }
  0x67   :  { %v3316_v35 = vld [vmem:[#allocation5 + $0x108] ss:$16 sps:$4 sm:$0xff]   ;;  %v3317_v36 = vld [vmem:[#allocation5 + $0x124] ss:$16 sps:$4 sm:$0xff]   ;;  %v3319_v37 = vld [vmem:[#allocation5 + $0x12c] ss:$16 sps:$4 sm:$0xff]  }
  0x68   :  { %v3321_v38 = vld [vmem:[#allocation5 + $0x120] ss:$16 sps:$4 sm:$0xff]   ;;  %v3322_v39 = vld [vmem:[#allocation5 + $0x128] ss:$16 sps:$4 sm:$0xff]   ;;  %v3323_v40 = vld [vmem:[#allocation5 + $0x144] ss:$16 sps:$4 sm:$0xff]  }
  0x69   :  { %1697 = vmatpush1.bf16.msra.mxu0 %v3285_v14  ;;  %1861 = vmatpush1.bf16.msra.mxu1 %v3286_v15  ;;  %v3325_v41 = vld [vmem:[#allocation5 + $0x14c] ss:$16 sps:$4 sm:$0xff]   ;;  %v3327_v42 = vld [vmem:[#allocation5 + $0x140] ss:$16 sps:$4 sm:$0xff]   ;;  %v3328_v43 = vld [vmem:[#allocation5 + $0x148] ss:$16 sps:$4 sm:$0xff]  }
  0x6a   :  { %1698 = vmatprep.subr.bf16.mxu0 %v3287_v16  ;;  %1862 = vmatprep.subr.bf16.mxu1 %v3289_v17  ;;  %v3329_v44 = vld [vmem:[#allocation5 + $0x164] ss:$16 sps:$4 sm:$0xff]   ;;  %v3331_v45 = vld [vmem:[#allocation5 + $0x16c] ss:$16 sps:$4 sm:$0xff]   ;;  %v3333_v47 = vld [vmem:[#allocation5 + $0x160] ss:$16 sps:$4 sm:$0xff]  }
  0x6b   :  { %v100_v46 = vld [vmem:[#allocation2] sm:$0xff]  ;;  %v3334_v49 = vld [vmem:[#allocation5 + $0x168] ss:$16 sps:$4 sm:$0xff]   ;;  %v3337_v51 = vld [vmem:[#allocation5 + $0x18c] ss:$16 sps:$4 sm:$0xff]   ;;  %vm3927_vm0 = vmmov 0  }
  0x6c   :  { %v2811_v48 = vcombine.high %v100_v46, %v100_v46  ;;  %v3335_v50 = vld [vmem:[#allocation5 + $0x184] ss:$16 sps:$4 sm:$0xff]   ;;  %v3339_v52 = vld [vmem:[#allocation5 + $0x180] ss:$16 sps:$4 sm:$0xff]   ;;  %v3340_v53 = vld [vmem:[#allocation5 + $0x188] ss:$16 sps:$4 sm:$0xff]   ;;  %v2810_v4 = vcombine.low %v100_v46, %v100_v46 }
  0x6d   :  { %1699 = vmatpush1.bf16.msra.mxu0 %v3291_v18  ;;  %1863 = vmatpush1.bf16.msra.mxu1 %v3292_v19  ;;  %v3341_v54 = vld [vmem:[#allocation5 + $0x1a4] ss:$16 sps:$4 sm:$0xff]   ;;  %v3343_v55 = vld [vmem:[#allocation5 + $0x1ac] ss:$16 sps:$4 sm:$0xff]   ;;  %v3345_v56 = vld [vmem:[#allocation5 + $0x1a0] ss:$16 sps:$4 sm:$0xff]  }
  0x6e   :  { %1700 = vmatprep.subr.bf16.mxu0 %v3293_v20  ;;  %1864 = vmatprep.subr.bf16.mxu1 %v3295_v21  ;;  %v3346_v57 = vld [vmem:[#allocation5 + $0x1a8] ss:$16 sps:$4 sm:$0xff]   ;;  %v3347_v58 = vld [vmem:[#allocation5 + $0x1c4] ss:$16 sps:$4 sm:$0xff]   ;;  %v3349_v59 = vld [vmem:[#allocation5 + $0x1cc] ss:$16 sps:$4 sm:$0xff]  }
  0x6f   :  { %1722 = vmatprep.mubr.bf16.mxu0 %v2811_v48  ;;  %1886 = vmatprep.mubr.bf16.mxu1 %v2811_v48  ;;  %v3351_v60 = vld [vmem:[#allocation5 + $0x1c0] ss:$16 sps:$4 sm:$0xff]   ;;  %v3352_v61 = vld [vmem:[#allocation5 + $0x1c8] ss:$16 sps:$4 sm:$0xff]   ;;  %v3353_v62 = vld [vmem:[#allocation5 + $0x1e4] ss:$16 sps:$4 sm:$0xff]  }
  0x70   :  { %v3355_v63 = vld [vmem:[#allocation5 + $0x1ec] ss:$16 sps:$4 sm:$0xff]   ;;  %v3357_v0 = vld [vmem:[#allocation5 + $0x1e0] ss:$16 sps:$4 sm:$0xff]   ;;  %v3358_v1 = vld [vmem:[#allocation5 + $0x1e8] ss:$16 sps:$4 sm:$0xff]  }
  0x71   :  { %1701 = vmatpush1.bf16.msra.mxu0 %v3297_v22  ;;  %1865 = vmatpush1.bf16.msra.mxu1 %v3298_v23  ;;  %v3363_v2 = vld [vmem:[#allocation5 + $0x204] ss:$16 sps:$4 sm:$0xff]   ;;  %v3366_v3 = vld [vmem:[#allocation5 + $0x20c] ss:$16 sps:$4 sm:$0xff]   ;;  %v3361_v5 = vld [vmem:[#allocation5 + $0x200] ss:$16 sps:$4 sm:$0xff]  }
  0x72   :  { %1702 = vmatprep.subr.bf16.mxu0 %v3299_v24  ;;  %1866 = vmatprep.subr.bf16.mxu1 %v3301_v25  ;;  %v3364_v6 = vld [vmem:[#allocation5 + $0x208] ss:$16 sps:$4 sm:$0xff]   ;;  %v3369_v7 = vld [vmem:[#allocation5 + $0x224] ss:$16 sps:$4 sm:$0xff]   ;;  %v3372_v8 = vld [vmem:[#allocation5 + $0x22c] ss:$16 sps:$4 sm:$0xff]  }
  0x73   :  { %v3367_v9 = vld [vmem:[#allocation5 + $0x220] ss:$16 sps:$4 sm:$0xff]   ;;  %v3370_v10 = vld [vmem:[#allocation5 + $0x228] ss:$16 sps:$4 sm:$0xff]   ;;  %v3375_v11 = vld [vmem:[#allocation5 + $0x244] ss:$16 sps:$4 sm:$0xff]  }
  0x74   :  { %v3378_v12 = vld [vmem:[#allocation5 + $0x24c] ss:$16 sps:$4 sm:$0xff]   ;;  %v3373_v13 = vld [vmem:[#allocation5 + $0x240] ss:$16 sps:$4 sm:$0xff]   ;;  %v3376_v14 = vld [vmem:[#allocation5 + $0x248] ss:$16 sps:$4 sm:$0xff]  }
  0x75   :  { %1703 = vmatpush1.bf16.msra.mxu0 %v3303_v26  ;;  %1867 = vmatpush1.bf16.msra.mxu1 %v3304_v27  ;;  %v3381_v15 = vld [vmem:[#allocation5 + $0x264] ss:$16 sps:$4 sm:$0xff]   ;;  %v3384_v16 = vld [vmem:[#allocation5 + $0x26c] ss:$16 sps:$4 sm:$0xff]   ;;  %v3379_v17 = vld [vmem:[#allocation5 + $0x260] ss:$16 sps:$4 sm:$0xff]  }
  0x76   :  { %1704 = vmatprep.subr.bf16.mxu0 %v3305_v28  ;;  %1868 = vmatprep.subr.bf16.mxu1 %v3307_v29  ;;  %v3382_v18 = vld [vmem:[#allocation5 + $0x268] ss:$16 sps:$4 sm:$0xff]   ;;  %v3387_v19 = vld [vmem:[#allocation5 + $0x284] ss:$16 sps:$4 sm:$0xff]   ;;  %v3390_v20 = vld [vmem:[#allocation5 + $0x28c] ss:$16 sps:$4 sm:$0xff]  }
  0x77   :  { %v3385_v21 = vld [vmem:[#allocation5 + $0x280] ss:$16 sps:$4 sm:$0xff]   ;;  %v3388_v22 = vld [vmem:[#allocation5 + $0x288] ss:$16 sps:$4 sm:$0xff]   ;;  %v3393_v23 = vld [vmem:[#allocation5 + $0x2a4] ss:$16 sps:$4 sm:$0xff]  }
  0x78   :  { %v3396_v24 = vld [vmem:[#allocation5 + $0x2ac] ss:$16 sps:$4 sm:$0xff]   ;;  %v3391_v25 = vld [vmem:[#allocation5 + $0x2a0] ss:$16 sps:$4 sm:$0xff]   ;;  %v3394_v26 = vld [vmem:[#allocation5 + $0x2a8] ss:$16 sps:$4 sm:$0xff]  }
  0x79   :  { %1705 = vmatpush1.bf16.msra.mxu0 %v3309_v30  ;;  %1869 = vmatpush1.bf16.msra.mxu1 %v3310_v31  ;;  %v3399_v27 = vld [vmem:[#allocation5 + $0x2c4] ss:$16 sps:$4 sm:$0xff]   ;;  %v3402_v28 = vld [vmem:[#allocation5 + $0x2cc] ss:$16 sps:$4 sm:$0xff]   ;;  %v3397_v31 = vld [vmem:[#allocation5 + $0x2c0] ss:$16 sps:$4 sm:$0xff]  }
  0x7a   :  { %1706 = vmatprep.subr.bf16.mxu0 %v3311_v32  ;;  %1870 = vmatprep.subr.bf16.mxu1 %v3313_v33  ;;  %v4052_v29 = vld [vmem:[#allocation2 + $0x8] sm:$0xff]  ;;  %v3405_v33 = vld [vmem:[#allocation5 + $0x2e4] ss:$16 sps:$4 sm:$0xff]   ;;  %s3928_s12 = smov [#allocation11]  }
  0x7b   :  { %v2813_v30 = vcombine.high %v4052_v29, %v4052_v29  ;;  %v3400_v32 = vld [vmem:[#allocation5 + $0x2c8] ss:$16 sps:$4 sm:$0xff]   ;;  %v3426_v46 = vld [vmem:[#allocation5 + $0x34c] ss:$16 sps:$4 sm:$0xff]   ;;  %s2799_s13 = sshll.u32 %s3928_s12, 4  ;;  %s2800_s13 = int_to_ptr.vmem [resolvable:$true] %s2799_s13 }
  0x7c   :  { %v3424_v48 = vld [vmem:[#allocation5 + $0x348] ss:$16 sps:$4 sm:$0xff]   ;;  %p3890_p13 = scmp.lt.s32.totalorder %s2800_s13, %s2800_s13 }
  0x7d   :  { %1707 = vmatpush1.bf16.msra.mxu0 %v3315_v34  ;;  %1871 = vmatpush1.bf16.msra.mxu1 %v3316_v35  ;;  %v3408_v34 = vld [vmem:[#allocation5 + $0x2ec] ss:$16 sps:$4 sm:$0xff]   ;;  %v3403_v35 = vld [vmem:[#allocation5 + $0x2e0] ss:$16 sps:$4 sm:$0xff]  }
  0x7e   :  { %1708 = vmatprep.subr.bf16.mxu0 %v3317_v36  ;;  %1872 = vmatprep.subr.bf16.mxu1 %v3319_v37  ;;  %v3406_v36 = vld [vmem:[#allocation5 + $0x2e8] ss:$16 sps:$4 sm:$0xff]   ;;  %v3411_v37 = vld [vmem:[#allocation5 + $0x304] ss:$16 sps:$4 sm:$0xff]  }
  0x81   :  { %1709 = vmatpush1.bf16.msra.mxu0 %v3321_v38  ;;  %1873 = vmatpush1.bf16.msra.mxu1 %v3322_v39  ;;  %v3414_v38 = vld [vmem:[#allocation5 + $0x30c] ss:$16 sps:$4 sm:$0xff]   ;;  %v3409_v39 = vld [vmem:[#allocation5 + $0x300] ss:$16 sps:$4 sm:$0xff]  }
  0x82   :  { %1710 = vmatprep.subr.bf16.mxu0 %v3323_v40  ;;  %1874 = vmatprep.subr.bf16.mxu1 %v3325_v41  ;;  %v3412_v40 = vld [vmem:[#allocation5 + $0x308] ss:$16 sps:$4 sm:$0xff]   ;;  %v3417_v41 = vld [vmem:[#allocation5 + $0x324] ss:$16 sps:$4 sm:$0xff]  }
  0x85   :  { %1711 = vmatpush1.bf16.msra.mxu0 %v3327_v42  ;;  %1875 = vmatpush1.bf16.msra.mxu1 %v3328_v43  ;;  %v3420_v42 = vld [vmem:[#allocation5 + $0x32c] ss:$16 sps:$4 sm:$0xff]   ;;  %v3415_v43 = vld [vmem:[#allocation5 + $0x320] ss:$16 sps:$4 sm:$0xff]  }
  0x86   :  { %1712 = vmatprep.subr.bf16.mxu0 %v3329_v44  ;;  %1876 = vmatprep.subr.bf16.mxu1 %v3331_v45  ;;  %v3418_v44 = vld [vmem:[#allocation5 + $0x328] ss:$16 sps:$4 sm:$0xff]   ;;  %v3423_v45 = vld [vmem:[#allocation5 + $0x344] ss:$16 sps:$4 sm:$0xff]  }
  0x89   :  { %1713 = vmatpush1.bf16.msra.mxu0 %v3333_v47  ;;  %1877 = vmatpush1.bf16.msra.mxu1 %v3334_v49  ;;  %v3421_v47 = vld [vmem:[#allocation5 + $0x340] ss:$16 sps:$4 sm:$0xff]   ;;  %v3429_v49 = vld [vmem:[#allocation5 + $0x364] ss:$16 sps:$4 sm:$0xff]  }
  0x8a   :  { %1714 = vmatprep.subr.bf16.mxu0 %v3335_v50  ;;  %1878 = vmatprep.subr.bf16.mxu1 %v3337_v51  ;;  %v3432_v50 = vld [vmem:[#allocation5 + $0x36c] ss:$16 sps:$4 sm:$0xff]   ;;  %v3427_v51 = vld [vmem:[#allocation5 + $0x360] ss:$16 sps:$4 sm:$0xff]  }
  0x8d   :  { %1715 = vmatpush1.bf16.msra.mxu0 %v3339_v52  ;;  %1879 = vmatpush1.bf16.msra.mxu1 %v3340_v53  ;;  %v3430_v52 = vld [vmem:[#allocation5 + $0x368] ss:$16 sps:$4 sm:$0xff]   ;;  %v3435_v53 = vld [vmem:[#allocation5 + $0x384] ss:$16 sps:$4 sm:$0xff]  }
  0x8e   :  { %1716 = vmatprep.subr.bf16.mxu0 %v3341_v54  ;;  %1880 = vmatprep.subr.bf16.mxu1 %v3343_v55  ;;  %v3438_v54 = vld [vmem:[#allocation5 + $0x38c] ss:$16 sps:$4 sm:$0xff]   ;;  %v3433_v55 = vld [vmem:[#allocation5 + $0x380] ss:$16 sps:$4 sm:$0xff]  }
  0x91   :  { %1717 = vmatpush1.bf16.msra.mxu0 %v3345_v56  ;;  %1881 = vmatpush1.bf16.msra.mxu1 %v3346_v57  ;;  %v3436_v56 = vld [vmem:[#allocation5 + $0x388] ss:$16 sps:$4 sm:$0xff]   ;;  %v3441_v57 = vld [vmem:[#allocation5 + $0x3a4] ss:$16 sps:$4 sm:$0xff]  }
  0x92   :  { %1718 = vmatprep.subr.bf16.mxu0 %v3347_v58  ;;  %1882 = vmatprep.subr.bf16.mxu1 %v3349_v59  ;;  %v3444_v58 = vld [vmem:[#allocation5 + $0x3ac] ss:$16 sps:$4 sm:$0xff]   ;;  %v3439_v59 = vld [vmem:[#allocation5 + $0x3a0] ss:$16 sps:$4 sm:$0xff]  }
  0x95   :  { %1719 = vmatpush1.bf16.msra.mxu0 %v3351_v60  ;;  %1883 = vmatpush1.bf16.msra.mxu1 %v3352_v61  ;;  %v3442_v60 = vld [vmem:[#allocation5 + $0x3a8] ss:$16 sps:$4 sm:$0xff]   ;;  %v3447_v61 = vld [vmem:[#allocation5 + $0x3c4] ss:$16 sps:$4 sm:$0xff]  }
  0x96   :  { %1720 = vmatprep.subr.bf16.mxu0 %v3353_v62  ;;  %1884 = vmatprep.subr.bf16.mxu1 %v3355_v63  ;;  %v3450_v62 = vld [vmem:[#allocation5 + $0x3cc] ss:$16 sps:$4 sm:$0xff]   ;;  %v3445_v63 = vld [vmem:[#allocation5 + $0x3c0] ss:$16 sps:$4 sm:$0xff]  }
  0x99   :  { %1721 = vmatpush1.bf16.msra.mxu0 %v3357_v0  ;;  %1885 = vmatpush1.bf16.msra.mxu1 %v3358_v1  ;;  %v3448_v0 = vld [vmem:[#allocation5 + $0x3c8] ss:$16 sps:$4 sm:$0xff]   ;;  %v3453_v1 = vld [vmem:[#allocation5 + $0x3e4] ss:$16 sps:$4 sm:$0xff]  }
  0x9a   :  { %1731 = vmatprep.subr.bf16.mxu0 %v3363_v2  ;;  %1895 = vmatprep.subr.bf16.mxu1 %v3366_v3  ;;  %v3456_v2 = vld [vmem:[#allocation5 + $0x3ec] ss:$16 sps:$4 sm:$0xff]   ;;  %v3451_v3 = vld [vmem:[#allocation5 + $0x3e0] ss:$16 sps:$4 sm:$0xff]  }
  0x9c   :  { %1723 = vmatmul.mubr.bf16.vlgmr.msra.gmra.mrb[0].mxu0 %v2810_v4  ;;  %1887 = vmatmul.mubr.bf16.vlgmr.msra.gmra.mrb[0].mxu1 %v2810_v4  ;;  %v3454_v4 = vld [vmem:[#allocation5 + $0x3e8] ss:$16 sps:$4 sm:$0xff]  }
  0x9d   :  { %1732 = vmatpush1.bf16.msra.mxu0 %v3361_v5  ;;  %1896 = vmatpush1.bf16.msra.mxu1 %v3364_v6  ;;  %v3461_v5 = vld [vmem:[#allocation5 + $0x404] ss:$16 sps:$4 sm:$0xff]   ;;  %v3464_v6 = vld [vmem:[#allocation5 + $0x40c] ss:$16 sps:$4 sm:$0xff]  }
  0x9e   :  { %1733 = vmatprep.subr.bf16.mxu0 %v3369_v7  ;;  %1897 = vmatprep.subr.bf16.mxu1 %v3372_v8  ;;  %v2812_v7 = vcombine.low %v4052_v29, %v4052_v29  ;;  %v3459_v8 = vld [vmem:[#allocation5 + $0x400] ss:$16 sps:$4 sm:$0xff]   ;;  %v3494_v29 = vld [vmem:[#allocation5 + $0x4ac] ss:$16 sps:$4 sm:$0xff]  }
  0x9f   :  { %1763 = vmatprep.mubr.bf16.mxu0 %v2813_v30  ;;  %1927 = vmatprep.mubr.bf16.mxu1 %v2813_v30  ;;  %v3489_v30 = vld [vmem:[#allocation5 + $0x4a0] ss:$16 sps:$4 sm:$0xff]  }
  0xa1   :  { %1734 = vmatpush1.bf16.msra.mxu0 %v3367_v9  ;;  %1898 = vmatpush1.bf16.msra.mxu1 %v3370_v10  ;;  %v3462_v9 = vld [vmem:[#allocation5 + $0x408] ss:$16 sps:$4 sm:$0xff]   ;;  %v3467_v10 = vld [vmem:[#allocation5 + $0x424] ss:$16 sps:$4 sm:$0xff]  }
  0xa2   :  { %1735 = vmatprep.subr.bf16.mxu0 %v3375_v11  ;;  %1899 = vmatprep.subr.bf16.mxu1 %v3378_v12  ;;  %v4058_v11 = vld [vmem:[#allocation2 + $0x10] sm:$0xff]  ;;  %v3470_v12 = vld [vmem:[#allocation5 + $0x42c] ss:$16 sps:$4 sm:$0xff]  }
  0xa5   :  { %1736 = vmatpush1.bf16.msra.mxu0 %v3373_v13  ;;  %1900 = vmatpush1.bf16.msra.mxu1 %v3376_v14  ;;  %v2815_v13 = vcombine.high %v4058_v11, %v4058_v11  ;;  %v3465_v14 = vld [vmem:[#allocation5 + $0x420] ss:$16 sps:$4 sm:$0xff]  }
  0xa6   :  { %1737 = vmatprep.subr.bf16.mxu0 %v3381_v15  ;;  %1901 = vmatprep.subr.bf16.mxu1 %v3384_v16  ;;  %v3468_v15 = vld [vmem:[#allocation5 + $0x428] ss:$16 sps:$4 sm:$0xff]   ;;  %v3473_v16 = vld [vmem:[#allocation5 + $0x444] ss:$16 sps:$4 sm:$0xff]  }
  0xa9   :  { %1738 = vmatpush1.bf16.msra.mxu0 %v3379_v17  ;;  %1902 = vmatpush1.bf16.msra.mxu1 %v3382_v18  ;;  %v3476_v17 = vld [vmem:[#allocation5 + $0x44c] ss:$16 sps:$4 sm:$0xff]   ;;  %v3471_v18 = vld [vmem:[#allocation5 + $0x440] ss:$16 sps:$4 sm:$0xff]  }
  0xaa   :  { %1739 = vmatprep.subr.bf16.mxu0 %v3387_v19  ;;  %1903 = vmatprep.subr.bf16.mxu1 %v3390_v20  ;;  %v3474_v19 = vld [vmem:[#allocation5 + $0x448] ss:$16 sps:$4 sm:$0xff]   ;;  %v3479_v20 = vld [vmem:[#allocation5 + $0x464] ss:$16 sps:$4 sm:$0xff]  }
  0xad   :  { %1740 = vmatpush1.bf16.msra.mxu0 %v3385_v21  ;;  %1904 = vmatpush1.bf16.msra.mxu1 %v3388_v22  ;;  %v3482_v21 = vld [vmem:[#allocation5 + $0x46c] ss:$16 sps:$4 sm:$0xff]   ;;  %v3477_v22 = vld [vmem:[#allocation5 + $0x460] ss:$16 sps:$4 sm:$0xff]  }
  0xae   :  { %1741 = vmatprep.subr.bf16.mxu0 %v3393_v23  ;;  %1905 = vmatprep.subr.bf16.mxu1 %v3396_v24  ;;  %v3480_v23 = vld [vmem:[#allocation5 + $0x468] ss:$16 sps:$4 sm:$0xff]   ;;  %v3485_v24 = vld [vmem:[#allocation5 + $0x484] ss:$16 sps:$4 sm:$0xff]  }
  0xb1   :  { %1742 = vmatpush1.bf16.msra.mxu0 %v3391_v25  ;;  %1906 = vmatpush1.bf16.msra.mxu1 %v3394_v26  ;;  %v3488_v25 = vld [vmem:[#allocation5 + $0x48c] ss:$16 sps:$4 sm:$0xff]   ;;  %v3483_v26 = vld [vmem:[#allocation5 + $0x480] ss:$16 sps:$4 sm:$0xff]  }
  0xb2   :  { %1743 = vmatprep.subr.bf16.mxu0 %v3399_v27  ;;  %1907 = vmatprep.subr.bf16.mxu1 %v3402_v28  ;;  %v3486_v27 = vld [vmem:[#allocation5 + $0x488] ss:$16 sps:$4 sm:$0xff]   ;;  %v3491_v28 = vld [vmem:[#allocation5 + $0x4a4] ss:$16 sps:$4 sm:$0xff]  }
  0xb5   :  { %1744 = vmatpush1.bf16.msra.mxu0 %v3397_v31  ;;  %1908 = vmatpush1.bf16.msra.mxu1 %v3400_v32  ;;  %v3492_v31 = vld [vmem:[#allocation5 + $0x4a8] ss:$16 sps:$4 sm:$0xff]   ;;  %v3497_v32 = vld [vmem:[#allocation5 + $0x4c4] ss:$16 sps:$4 sm:$0xff]  }
  0xb6   :  { %1745 = vmatprep.subr.bf16.mxu0 %v3405_v33  ;;  %1909 = vmatprep.subr.bf16.mxu1 %v3408_v34  ;;  %v3500_v33 = vld [vmem:[#allocation5 + $0x4cc] ss:$16 sps:$4 sm:$0xff]   ;;  %v3495_v34 = vld [vmem:[#allocation5 + $0x4c0] ss:$16 sps:$4 sm:$0xff]  }
  0xb9   :  { %1746 = vmatpush1.bf16.msra.mxu0 %v3403_v35  ;;  %1910 = vmatpush1.bf16.msra.mxu1 %v3406_v36  ;;  %v3498_v35 = vld [vmem:[#allocation5 + $0x4c8] ss:$16 sps:$4 sm:$0xff]   ;;  %v3503_v36 = vld [vmem:[#allocation5 + $0x4e4] ss:$16 sps:$4 sm:$0xff]  }
  0xba   :  { %1747 = vmatprep.subr.bf16.mxu0 %v3411_v37  ;;  %1911 = vmatprep.subr.bf16.mxu1 %v3414_v38  ;;  %v3506_v37 = vld [vmem:[#allocation5 + $0x4ec] ss:$16 sps:$4 sm:$0xff]   ;;  %v3501_v38 = vld [vmem:[#allocation5 + $0x4e0] ss:$16 sps:$4 sm:$0xff]  }
  0xbd   :  { %1748 = vmatpush1.bf16.msra.mxu0 %v3409_v39  ;;  %1912 = vmatpush1.bf16.msra.mxu1 %v3412_v40  ;;  %v3504_v39 = vld [vmem:[#allocation5 + $0x4e8] ss:$16 sps:$4 sm:$0xff]   ;;  %v3509_v40 = vld [vmem:[#allocation5 + $0x504] ss:$16 sps:$4 sm:$0xff]  }
  0xbe   :  { %1749 = vmatprep.subr.bf16.mxu0 %v3417_v41  ;;  %1913 = vmatprep.subr.bf16.mxu1 %v3420_v42  ;;  %v3512_v41 = vld [vmem:[#allocation5 + $0x50c] ss:$16 sps:$4 sm:$0xff]   ;;  %v3507_v42 = vld [vmem:[#allocation5 + $0x500] ss:$16 sps:$4 sm:$0xff]  }
  0xc1   :  { %1750 = vmatpush1.bf16.msra.mxu0 %v3415_v43  ;;  %1914 = vmatpush1.bf16.msra.mxu1 %v3418_v44  ;;  %v3510_v43 = vld [vmem:[#allocation5 + $0x508] ss:$16 sps:$4 sm:$0xff]   ;;  %v3515_v44 = vld [vmem:[#allocation5 + $0x524] ss:$16 sps:$4 sm:$0xff]  }
  0xc2   :  { %1751 = vmatprep.subr.bf16.mxu0 %v3423_v45  ;;  %1915 = vmatprep.subr.bf16.mxu1 %v3426_v46  ;;  %v3518_v45 = vld [vmem:[#allocation5 + $0x52c] ss:$16 sps:$4 sm:$0xff]   ;;  %v3513_v46 = vld [vmem:[#allocation5 + $0x520] ss:$16 sps:$4 sm:$0xff]  }
  0xc5   :  { %1752 = vmatpush1.bf16.msra.mxu0 %v3421_v47  ;;  %1916 = vmatpush1.bf16.msra.mxu1 %v3424_v48  ;;  %v3516_v47 = vld [vmem:[#allocation5 + $0x528] ss:$16 sps:$4 sm:$0xff]   ;;  %v3521_v48 = vld [vmem:[#allocation5 + $0x544] ss:$16 sps:$4 sm:$0xff]  }
  0xc6   :  { %1753 = vmatprep.subr.bf16.mxu0 %v3429_v49  ;;  %1917 = vmatprep.subr.bf16.mxu1 %v3432_v50  ;;  %v3524_v49 = vld [vmem:[#allocation5 + $0x54c] ss:$16 sps:$4 sm:$0xff]   ;;  %v3519_v50 = vld [vmem:[#allocation5 + $0x540] ss:$16 sps:$4 sm:$0xff]  }
  0xc9   :  { %1754 = vmatpush1.bf16.msra.mxu0 %v3427_v51  ;;  %1918 = vmatpush1.bf16.msra.mxu1 %v3430_v52  ;;  %v3522_v51 = vld [vmem:[#allocation5 + $0x548] ss:$16 sps:$4 sm:$0xff]   ;;  %v3527_v52 = vld [vmem:[#allocation5 + $0x564] ss:$16 sps:$4 sm:$0xff]  }
  0xca   :  { %1755 = vmatprep.subr.bf16.mxu0 %v3435_v53  ;;  %1919 = vmatprep.subr.bf16.mxu1 %v3438_v54  ;;  %v3530_v53 = vld [vmem:[#allocation5 + $0x56c] ss:$16 sps:$4 sm:$0xff]   ;;  %v3525_v54 = vld [vmem:[#allocation5 + $0x560] ss:$16 sps:$4 sm:$0xff]  }
  0xcd   :  { %1756 = vmatpush1.bf16.msra.mxu0 %v3433_v55  ;;  %1920 = vmatpush1.bf16.msra.mxu1 %v3436_v56  ;;  %v3528_v55 = vld [vmem:[#allocation5 + $0x568] ss:$16 sps:$4 sm:$0xff]   ;;  %v3533_v56 = vld [vmem:[#allocation5 + $0x584] ss:$16 sps:$4 sm:$0xff]  }
  0xce   :  { %1757 = vmatprep.subr.bf16.mxu0 %v3441_v57  ;;  %1921 = vmatprep.subr.bf16.mxu1 %v3444_v58  ;;  %v3536_v57 = vld [vmem:[#allocation5 + $0x58c] ss:$16 sps:$4 sm:$0xff]   ;;  %v3531_v58 = vld [vmem:[#allocation5 + $0x580] ss:$16 sps:$4 sm:$0xff]  }
  0xd1   :  { %1758 = vmatpush1.bf16.msra.mxu0 %v3439_v59  ;;  %1922 = vmatpush1.bf16.msra.mxu1 %v3442_v60  ;;  %v3534_v59 = vld [vmem:[#allocation5 + $0x588] ss:$16 sps:$4 sm:$0xff]   ;;  %v3539_v60 = vld [vmem:[#allocation5 + $0x5a4] ss:$16 sps:$4 sm:$0xff]  }
  0xd2   :  { %1759 = vmatprep.subr.bf16.mxu0 %v3447_v61  ;;  %1923 = vmatprep.subr.bf16.mxu1 %v3450_v62  ;;  %v3542_v61 = vld [vmem:[#allocation5 + $0x5ac] ss:$16 sps:$4 sm:$0xff]   ;;  %v3537_v62 = vld [vmem:[#allocation5 + $0x5a0] ss:$16 sps:$4 sm:$0xff]  }
  0xd5   :  { %1760 = vmatpush1.bf16.msra.mxu0 %v3445_v63  ;;  %1924 = vmatpush1.bf16.msra.mxu1 %v3448_v0  ;;  %v3540_v63 = vld [vmem:[#allocation5 + $0x5a8] ss:$16 sps:$4 sm:$0xff]   ;;  %v3545_v0 = vld [vmem:[#allocation5 + $0x5c4] ss:$16 sps:$4 sm:$0xff]  }
  0xd6   :  { %1761 = vmatprep.subr.bf16.mxu0 %v3453_v1  ;;  %1925 = vmatprep.subr.bf16.mxu1 %v3456_v2  ;;  %v3548_v1 = vld [vmem:[#allocation5 + $0x5cc] ss:$16 sps:$4 sm:$0xff]   ;;  %v3543_v2 = vld [vmem:[#allocation5 + $0x5c0] ss:$16 sps:$4 sm:$0xff]  }
  0xd9   :  { %1762 = vmatpush1.bf16.msra.mxu0 %v3451_v3  ;;  %1926 = vmatpush1.bf16.msra.mxu1 %v3454_v4  ;;  %v3546_v3 = vld [vmem:[#allocation5 + $0x5c8] ss:$16 sps:$4 sm:$0xff]   ;;  %v3551_v4 = vld [vmem:[#allocation5 + $0x5e4] ss:$16 sps:$4 sm:$0xff]  }
  0xda   :  { %1772 = vmatprep.subr.bf16.mxu0 %v3461_v5  ;;  %1936 = vmatprep.subr.bf16.mxu1 %v3464_v6  ;;  %v3554_v5 = vld [vmem:[#allocation5 + $0x5ec] ss:$16 sps:$4 sm:$0xff]   ;;  %v3549_v6 = vld [vmem:[#allocation5 + $0x5e0] ss:$16 sps:$4 sm:$0xff]  }
  0xdc   :  { %1764 = vmatmul.mubr.bf16.vlgmr.msra.gmra.mrb[0].mxu0 %v2812_v7  ;;  %1928 = vmatmul.mubr.bf16.vlgmr.msra.gmra.mrb[0].mxu1 %v2812_v7  ;;  %v3552_v7 = vld [vmem:[#allocation5 + $0x5e8] ss:$16 sps:$4 sm:$0xff]  }
  0xdd   :  { %1773 = vmatpush1.bf16.msra.mxu0 %v3459_v8  ;;  %1937 = vmatpush1.bf16.msra.mxu1 %v3462_v9  ;;  %v3559_v8 = vld [vmem:[#allocation5 + $0x604] ss:$16 sps:$4 sm:$0xff]   ;;  %v3562_v9 = vld [vmem:[#allocation5 + $0x60c] ss:$16 sps:$4 sm:$0xff]  }
  0xde   :  { %1774 = vmatprep.subr.bf16.mxu0 %v3467_v10  ;;  %1938 = vmatprep.subr.bf16.mxu1 %v3470_v12  ;;  %v3557_v10 = vld [vmem:[#allocation5 + $0x600] ss:$16 sps:$4 sm:$0xff]   ;;  %v3560_v12 = vld [vmem:[#allocation5 + $0x608] ss:$16 sps:$4 sm:$0xff]  }
  0xdf   :  { %1804 = vmatprep.mubr.bf16.mxu0 %v2815_v13  ;;  %1968 = vmatprep.mubr.bf16.mxu1 %v2815_v13  ;;  %v2814_v13 = vcombine.low %v4058_v11, %v4058_v11  ;;  %v3569_v11 = vld [vmem:[#allocation5 + $0x640] ss:$16 sps:$4 sm:$0xff]  }
  0xe1   :  { %1775 = vmatpush1.bf16.msra.mxu0 %v3465_v14  ;;  %1939 = vmatpush1.bf16.msra.mxu1 %v3468_v15  ;;  %v3565_v14 = vld [vmem:[#allocation5 + $0x624] ss:$16 sps:$4 sm:$0xff]   ;;  %v4064_v15 = vld [vmem:[#allocation2 + $0x18] sm:$0xff] }
  0xe2   :  { %1776 = vmatprep.subr.bf16.mxu0 %v3473_v16  ;;  %1940 = vmatprep.subr.bf16.mxu1 %v3476_v17  ;;  %v3568_v16 = vld [vmem:[#allocation5 + $0x62c] ss:$16 sps:$4 sm:$0xff]   ;;  %v3563_v17 = vld [vmem:[#allocation5 + $0x620] ss:$16 sps:$4 sm:$0xff]  }
  0xe5   :  { %1777 = vmatpush1.bf16.msra.mxu0 %v3471_v18  ;;  %1941 = vmatpush1.bf16.msra.mxu1 %v3474_v19  ;;  %v3566_v18 = vld [vmem:[#allocation5 + $0x628] ss:$16 sps:$4 sm:$0xff]   ;;  %v2817_v19 = vcombine.high %v4064_v15, %v4064_v15 }
  0xe6   :  { %1778 = vmatprep.subr.bf16.mxu0 %v3479_v20  ;;  %1942 = vmatprep.subr.bf16.mxu1 %v3482_v21  ;;  %v3571_v20 = vld [vmem:[#allocation5 + $0x644] ss:$16 sps:$4 sm:$0xff]   ;;  %v3574_v21 = vld [vmem:[#allocation5 + $0x64c] ss:$16 sps:$4 sm:$0xff]  }
  0xe9   :  { %1779 = vmatpush1.bf16.msra.mxu0 %v3477_v22  ;;  %1943 = vmatpush1.bf16.msra.mxu1 %v3480_v23  ;;  %v3572_v22 = vld [vmem:[#allocation5 + $0x648] ss:$16 sps:$4 sm:$0xff]   ;;  %v3577_v23 = vld [vmem:[#allocation5 + $0x664] ss:$16 sps:$4 sm:$0xff]  }
  0xea   :  { %1780 = vmatprep.subr.bf16.mxu0 %v3485_v24  ;;  %1944 = vmatprep.subr.bf16.mxu1 %v3488_v25  ;;  %v3580_v24 = vld [vmem:[#allocation5 + $0x66c] ss:$16 sps:$4 sm:$0xff]   ;;  %v3575_v25 = vld [vmem:[#allocation5 + $0x660] ss:$16 sps:$4 sm:$0xff]  }
  0xed   :  { %1781 = vmatpush1.bf16.msra.mxu0 %v3483_v26  ;;  %1945 = vmatpush1.bf16.msra.mxu1 %v3486_v27  ;;  %v3578_v26 = vld [vmem:[#allocation5 + $0x668] ss:$16 sps:$4 sm:$0xff]   ;;  %v3583_v27 = vld [vmem:[#allocation5 + $0x684] ss:$16 sps:$4 sm:$0xff]  }
  0xee   :  { %1782 = vmatprep.subr.bf16.mxu0 %v3491_v28  ;;  %1946 = vmatprep.subr.bf16.mxu1 %v3494_v29  ;;  %v3586_v28 = vld [vmem:[#allocation5 + $0x68c] ss:$16 sps:$4 sm:$0xff]   ;;  %v3581_v29 = vld [vmem:[#allocation5 + $0x680] ss:$16 sps:$4 sm:$0xff]  }
  0xf1   :  { %1783 = vmatpush1.bf16.msra.mxu0 %v3489_v30  ;;  %1947 = vmatpush1.bf16.msra.mxu1 %v3492_v31  ;;  %v3584_v30 = vld [vmem:[#allocation5 + $0x688] ss:$16 sps:$4 sm:$0xff]   ;;  %v3589_v31 = vld [vmem:[#allocation5 + $0x6a4] ss:$16 sps:$4 sm:$0xff]  }
  0xf2   :  { %1784 = vmatprep.subr.bf16.mxu0 %v3497_v32  ;;  %1948 = vmatprep.subr.bf16.mxu1 %v3500_v33  ;;  %v3592_v32 = vld [vmem:[#allocation5 + $0x6ac] ss:$16 sps:$4 sm:$0xff]   ;;  %v3587_v33 = vld [vmem:[#allocation5 + $0x6a0] ss:$16 sps:$4 sm:$0xff]  }
  0xf5   :  { %1785 = vmatpush1.bf16.msra.mxu0 %v3495_v34  ;;  %1949 = vmatpush1.bf16.msra.mxu1 %v3498_v35  ;;  %v3590_v34 = vld [vmem:[#allocation5 + $0x6a8] ss:$16 sps:$4 sm:$0xff]   ;;  %v3595_v35 = vld [vmem:[#allocation5 + $0x6c4] ss:$16 sps:$4 sm:$0xff]  }
  0xf6   :  { %1786 = vmatprep.subr.bf16.mxu0 %v3503_v36  ;;  %1950 = vmatprep.subr.bf16.mxu1 %v3506_v37  ;;  %v3598_v36 = vld [vmem:[#allocation5 + $0x6cc] ss:$16 sps:$4 sm:$0xff]   ;;  %v3593_v37 = vld [vmem:[#allocation5 + $0x6c0] ss:$16 sps:$4 sm:$0xff]  }
  0xf9   :  { %1787 = vmatpush1.bf16.msra.mxu0 %v3501_v38  ;;  %1951 = vmatpush1.bf16.msra.mxu1 %v3504_v39  ;;  %v3596_v38 = vld [vmem:[#allocation5 + $0x6c8] ss:$16 sps:$4 sm:$0xff]   ;;  %v3601_v39 = vld [vmem:[#allocation5 + $0x6e4] ss:$16 sps:$4 sm:$0xff]  }
  0xfa   :  { %1788 = vmatprep.subr.bf16.mxu0 %v3509_v40  ;;  %1952 = vmatprep.subr.bf16.mxu1 %v3512_v41  ;;  %v3604_v40 = vld [vmem:[#allocation5 + $0x6ec] ss:$16 sps:$4 sm:$0xff]   ;;  %v3599_v41 = vld [vmem:[#allocation5 + $0x6e0] ss:$16 sps:$4 sm:$0xff]  }
  0xfd   :  { %1789 = vmatpush1.bf16.msra.mxu0 %v3507_v42  ;;  %1953 = vmatpush1.bf16.msra.mxu1 %v3510_v43  ;;  %v3602_v42 = vld [vmem:[#allocation5 + $0x6e8] ss:$16 sps:$4 sm:$0xff]   ;;  %v3607_v43 = vld [vmem:[#allocation5 + $0x704] ss:$16 sps:$4 sm:$0xff]  }
  0xfe   :  { %1790 = vmatprep.subr.bf16.mxu0 %v3515_v44  ;;  %1954 = vmatprep.subr.bf16.mxu1 %v3518_v45  ;;  %v3610_v44 = vld [vmem:[#allocation5 + $0x70c] ss:$16 sps:$4 sm:$0xff]   ;;  %v3605_v45 = vld [vmem:[#allocation5 + $0x700] ss:$16 sps:$4 sm:$0xff]  }
 0x101   :  { %1791 = vmatpush1.bf16.msra.mxu0 %v3513_v46  ;;  %1955 = vmatpush1.bf16.msra.mxu1 %v3516_v47  ;;  %v3608_v46 = vld [vmem:[#allocation5 + $0x708] ss:$16 sps:$4 sm:$0xff]   ;;  %v3613_v47 = vld [vmem:[#allocation5 + $0x724] ss:$16 sps:$4 sm:$0xff]  }
 0x102   :  { %1792 = vmatprep.subr.bf16.mxu0 %v3521_v48  ;;  %1956 = vmatprep.subr.bf16.mxu1 %v3524_v49  ;;  %v3616_v48 = vld [vmem:[#allocation5 + $0x72c] ss:$16 sps:$4 sm:$0xff]   ;;  %v3611_v49 = vld [vmem:[#allocation5 + $0x720] ss:$16 sps:$4 sm:$0xff]  }
 0x105   :  { %1793 = vmatpush1.bf16.msra.mxu0 %v3519_v50  ;;  %1957 = vmatpush1.bf16.msra.mxu1 %v3522_v51  ;;  %v3614_v50 = vld [vmem:[#allocation5 + $0x728] ss:$16 sps:$4 sm:$0xff]   ;;  %v3619_v51 = vld [vmem:[#allocation5 + $0x744] ss:$16 sps:$4 sm:$0xff]  }
 0x106   :  { %1794 = vmatprep.subr.bf16.mxu0 %v3527_v52  ;;  %1958 = vmatprep.subr.bf16.mxu1 %v3530_v53  ;;  %v3622_v52 = vld [vmem:[#allocation5 + $0x74c] ss:$16 sps:$4 sm:$0xff]   ;;  %v3617_v53 = vld [vmem:[#allocation5 + $0x740] ss:$16 sps:$4 sm:$0xff]  }
 0x109   :  { %1795 = vmatpush1.bf16.msra.mxu0 %v3525_v54  ;;  %1959 = vmatpush1.bf16.msra.mxu1 %v3528_v55  ;;  %v3620_v54 = vld [vmem:[#allocation5 + $0x748] ss:$16 sps:$4 sm:$0xff]   ;;  %v3625_v55 = vld [vmem:[#allocation5 + $0x764] ss:$16 sps:$4 sm:$0xff]  }
 0x10a   :  { %1796 = vmatprep.subr.bf16.mxu0 %v3533_v56  ;;  %1960 = vmatprep.subr.bf16.mxu1 %v3536_v57  ;;  %v3628_v56 = vld [vmem:[#allocation5 + $0x76c] ss:$16 sps:$4 sm:$0xff]   ;;  %v3623_v57 = vld [vmem:[#allocation5 + $0x760] ss:$16 sps:$4 sm:$0xff]  }
 0x10d   :  { %1797 = vmatpush1.bf16.msra.mxu0 %v3531_v58  ;;  %1961 = vmatpush1.bf16.msra.mxu1 %v3534_v59  ;;  %v3626_v58 = vld [vmem:[#allocation5 + $0x768] ss:$16 sps:$4 sm:$0xff]   ;;  %v3631_v59 = vld [vmem:[#allocation5 + $0x784] ss:$16 sps:$4 sm:$0xff]  }
 0x10e   :  { %1798 = vmatprep.subr.bf16.mxu0 %v3539_v60  ;;  %1962 = vmatprep.subr.bf16.mxu1 %v3542_v61  ;;  %v3634_v60 = vld [vmem:[#allocation5 + $0x78c] ss:$16 sps:$4 sm:$0xff]   ;;  %v3629_v61 = vld [vmem:[#allocation5 + $0x780] ss:$16 sps:$4 sm:$0xff]  }
 0x111   :  { %1799 = vmatpush1.bf16.msra.mxu0 %v3537_v62  ;;  %1963 = vmatpush1.bf16.msra.mxu1 %v3540_v63  ;;  %v3632_v62 = vld [vmem:[#allocation5 + $0x788] ss:$16 sps:$4 sm:$0xff]   ;;  %v3637_v63 = vld [vmem:[#allocation5 + $0x7a4] ss:$16 sps:$4 sm:$0xff]  }
 0x112   :  { %1800 = vmatprep.subr.bf16.mxu0 %v3545_v0  ;;  %1964 = vmatprep.subr.bf16.mxu1 %v3548_v1  ;;  %v3640_v0 = vld [vmem:[#allocation5 + $0x7ac] ss:$16 sps:$4 sm:$0xff]   ;;  %v3635_v1 = vld [vmem:[#allocation5 + $0x7a0] ss:$16 sps:$4 sm:$0xff]  }
 0x115   :  { %1801 = vmatpush1.bf16.msra.mxu0 %v3543_v2  ;;  %1965 = vmatpush1.bf16.msra.mxu1 %v3546_v3  ;;  %v3638_v2 = vld [vmem:[#allocation5 + $0x7a8] ss:$16 sps:$4 sm:$0xff]   ;;  %v3643_v3 = vld [vmem:[#allocation5 + $0x7c4] ss:$16 sps:$4 sm:$0xff]  }
 0x116   :  { %1802 = vmatprep.subr.bf16.mxu0 %v3551_v4  ;;  %1966 = vmatprep.subr.bf16.mxu1 %v3554_v5  ;;  %v3646_v4 = vld [vmem:[#allocation5 + $0x7cc] ss:$16 sps:$4 sm:$0xff]   ;;  %v3641_v5 = vld [vmem:[#allocation5 + $0x7c0] ss:$16 sps:$4 sm:$0xff]  }
 0x119   :  { %1803 = vmatpush1.bf16.msra.mxu0 %v3549_v6  ;;  %1967 = vmatpush1.bf16.msra.mxu1 %v3552_v7  ;;  %v3644_v6 = vld [vmem:[#allocation5 + $0x7c8] ss:$16 sps:$4 sm:$0xff]   ;;  %v3649_v7 = vld [vmem:[#allocation5 + $0x7e4] ss:$16 sps:$4 sm:$0xff]  }
 0x11a   :  { %1813 = vmatprep.subr.bf16.mxu0 %v3559_v8  ;;  %1977 = vmatprep.subr.bf16.mxu1 %v3562_v9  ;;  %v3652_v8 = vld [vmem:[#allocation5 + $0x7ec] ss:$16 sps:$4 sm:$0xff]   ;;  %v3647_v9 = vld [vmem:[#allocation5 + $0x7e0] ss:$16 sps:$4 sm:$0xff]  }
 0x11c   :  { %1805 = vmatmul.mubr.bf16.vlgmr.msra.gmra.mrb[0].mxu0 %v2814_v13  ;;  %1969 = vmatmul.mubr.bf16.vlgmr.msra.gmra.mrb[0].mxu1 %v2814_v13  ;;  %v2816_v13 = vcombine.low %v4064_v15, %v4064_v15  ;;  %v3667_v15 = vld [vmem:[#allocation7 + $0x40] ss:$8 sps:$4 sm:$0xff]  }
 0x11d   :  { %1814 = vmatpush1.bf16.msra.mxu0 %v3557_v10  ;;  %1978 = vmatpush1.bf16.msra.mxu1 %v3560_v12  ;;  %v3650_v10 = vld [vmem:[#allocation5 + $0x7e8] ss:$16 sps:$4 sm:$0xff]   ;;  %v3657_v12 = vld [vmem:[#allocation7 + $0x4] ss:$8 sps:$4 sm:$0xff]  }
 0x11e   :  { %1815 = vmatprep.subr.bf16.mxu0 %v3565_v14  ;;  %1979 = vmatprep.subr.bf16.mxu1 %v3568_v16  ;;  %v3655_v14 = vld [vmem:[#allocation7] ss:$8 sps:$4 sm:$0xff]   ;;  %v3660_v16 = vld [vmem:[#allocation7 + $0x14] ss:$8 sps:$4 sm:$0xff]  }
 0x11f   :  { %1845 = vmatprep.mubr.bf16.mxu0 %v2817_v19  ;;  %2009 = vmatprep.mubr.bf16.mxu1 %v2817_v19  ;;  %v3661_v19 = vld [vmem:[#allocation7 + $0x20] ss:$8 sps:$4 sm:$0xff]  }
 0x121   :  { %1816 = vmatpush1.bf16.msra.mxu0 %v3563_v17  ;;  %1980 = vmatpush1.bf16.msra.mxu1 %v3566_v18  ;;  %v3658_v17 = vld [vmem:[#allocation7 + $0x10] ss:$8 sps:$4 sm:$0xff]   ;;  %v3663_v18 = vld [vmem:[#allocation7 + $0x24] ss:$8 sps:$4 sm:$0xff]  }
 0x122   :  { %1817 = vmatprep.subr.bf16.mxu0 %v3571_v20  ;;  %1981 = vmatprep.subr.bf16.mxu1 %v3574_v21  ;;  %v3666_v20 = vld [vmem:[#allocation7 + $0x34] ss:$8 sps:$4 sm:$0xff]   ;;  %v3664_v21 = vld [vmem:[#allocation7 + $0x30] ss:$8 sps:$4 sm:$0xff]  }
 0x125   :  { %1818 = vmatpush1.bf16.msra.mxu0 %v3569_v11  ;;  %1982 = vmatpush1.bf16.msra.mxu1 %v3572_v22  ;;  %v3669_v11 = vld [vmem:[#allocation7 + $0x44] ss:$8 sps:$4 sm:$0xff]   ;;  %v3672_v22 = vld [vmem:[#allocation7 + $0x54] ss:$8 sps:$4 sm:$0xff]  }
 0x126   :  { %1819 = vmatprep.subr.bf16.mxu0 %v3577_v23  ;;  %1983 = vmatprep.subr.bf16.mxu1 %v3580_v24  ;;  %v3670_v23 = vld [vmem:[#allocation7 + $0x50] ss:$8 sps:$4 sm:$0xff]   ;;  %v3675_v24 = vld [vmem:[#allocation7 + $0x64] ss:$8 sps:$4 sm:$0xff]  }
 0x129   :  { %1820 = vmatpush1.bf16.msra.mxu0 %v3575_v25  ;;  %1984 = vmatpush1.bf16.msra.mxu1 %v3578_v26  ;;  %v3673_v25 = vld [vmem:[#allocation7 + $0x60] ss:$8 sps:$4 sm:$0xff]   ;;  %v3678_v26 = vld [vmem:[#allocation7 + $0x74] ss:$8 sps:$4 sm:$0xff]  }
 0x12a   :  { %1821 = vmatprep.subr.bf16.mxu0 %v3583_v27  ;;  %1985 = vmatprep.subr.bf16.mxu1 %v3586_v28  ;;  %v3676_v27 = vld [vmem:[#allocation7 + $0x70] ss:$8 sps:$4 sm:$0xff]   ;;  %v3681_v28 = vld [vmem:[#allocation7 + $0x84] ss:$8 sps:$4 sm:$0xff]  }
 0x12d   :  { %1822 = vmatpush1.bf16.msra.mxu0 %v3581_v29  ;;  %1986 = vmatpush1.bf16.msra.mxu1 %v3584_v30  ;;  %v3679_v29 = vld [vmem:[#allocation7 + $0x80] ss:$8 sps:$4 sm:$0xff]   ;;  %v3684_v30 = vld [vmem:[#allocation7 + $0x94] ss:$8 sps:$4 sm:$0xff]  }
 0x12e   :  { %1823 = vmatprep.subr.bf16.mxu0 %v3589_v31  ;;  %1987 = vmatprep.subr.bf16.mxu1 %v3592_v32  ;;  %v3682_v31 = vld [vmem:[#allocation7 + $0x90] ss:$8 sps:$4 sm:$0xff]   ;;  %v3687_v32 = vld [vmem:[#allocation7 + $0xa4] ss:$8 sps:$4 sm:$0xff]  }
 0x131   :  { %1824 = vmatpush1.bf16.msra.mxu0 %v3587_v33  ;;  %1988 = vmatpush1.bf16.msra.mxu1 %v3590_v34  ;;  %v3685_v33 = vld [vmem:[#allocation7 + $0xa0] ss:$8 sps:$4 sm:$0xff]   ;;  %v3690_v34 = vld [vmem:[#allocation7 + $0xb4] ss:$8 sps:$4 sm:$0xff]  }
 0x132   :  { %1825 = vmatprep.subr.bf16.mxu0 %v3595_v35  ;;  %1989 = vmatprep.subr.bf16.mxu1 %v3598_v36  ;;  %v3688_v35 = vld [vmem:[#allocation7 + $0xb0] ss:$8 sps:$4 sm:$0xff]   ;;  %v3693_v36 = vld [vmem:[#allocation7 + $0xc4] ss:$8 sps:$4 sm:$0xff]  }
 0x135   :  { %1826 = vmatpush1.bf16.msra.mxu0 %v3593_v37  ;;  %1990 = vmatpush1.bf16.msra.mxu1 %v3596_v38  ;;  %v3691_v37 = vld [vmem:[#allocation7 + $0xc0] ss:$8 sps:$4 sm:$0xff]   ;;  %v3696_v38 = vld [vmem:[#allocation7 + $0xd4] ss:$8 sps:$4 sm:$0xff]  }
 0x136   :  { %1827 = vmatprep.subr.bf16.mxu0 %v3601_v39  ;;  %1991 = vmatprep.subr.bf16.mxu1 %v3604_v40  ;;  %v3694_v39 = vld [vmem:[#allocation7 + $0xd0] ss:$8 sps:$4 sm:$0xff]   ;;  %v3699_v40 = vld [vmem:[#allocation7 + $0xe4] ss:$8 sps:$4 sm:$0xff]  }
 0x139   :  { %1828 = vmatpush1.bf16.msra.mxu0 %v3599_v41  ;;  %1992 = vmatpush1.bf16.msra.mxu1 %v3602_v42  ;;  %v3697_v41 = vld [vmem:[#allocation7 + $0xe0] ss:$8 sps:$4 sm:$0xff]   ;;  %v3702_v42 = vld [vmem:[#allocation7 + $0xf4] ss:$8 sps:$4 sm:$0xff]  }
 0x13a   :  { %1829 = vmatprep.subr.bf16.mxu0 %v3607_v43  ;;  %1993 = vmatprep.subr.bf16.mxu1 %v3610_v44  ;;  %v3700_v43 = vld [vmem:[#allocation7 + $0xf0] ss:$8 sps:$4 sm:$0xff]   ;;  %v3705_v44 = vld [vmem:[#allocation7 + $0x104] ss:$8 sps:$4 sm:$0xff]  }
 0x13d   :  { %1830 = vmatpush1.bf16.msra.mxu0 %v3605_v45  ;;  %1994 = vmatpush1.bf16.msra.mxu1 %v3608_v46  ;;  %v3751_v45 = vld [vmem:[#allocation8 + $0x40] sm:$0xff]  }
 0x13e   :  { %1831 = vmatprep.subr.bf16.mxu0 %v3613_v47  ;;  %1995 = vmatprep.subr.bf16.mxu1 %v3616_v48  ;;  %v3752_v46 = vld [vmem:[#allocation8] sm:$0xff]   ;;  %v3753_v47 = vld [vmem:[#allocation8 + $0x48] sm:$0xff]  }
 0x13f   :  { %v3754_v48 = vld [vmem:[#allocation8 + $0x8] sm:$0xff]  }
 0x141   :  { %1832 = vmatpush1.bf16.msra.mxu0 %v3611_v49  ;;  %1996 = vmatpush1.bf16.msra.mxu1 %v3614_v50  ;;  %v3755_v49 = vld [vmem:[#allocation8 + $0x50] sm:$0xff]  }
 0x142   :  { %1833 = vmatprep.subr.bf16.mxu0 %v3619_v51  ;;  %1997 = vmatprep.subr.bf16.mxu1 %v3622_v52  ;;  %v3756_v50 = vld [vmem:[#allocation8 + $0x10] sm:$0xff]   ;;  %v3757_v51 = vld [vmem:[#allocation8 + $0x58] sm:$0xff]  }
 0x143   :  { %v3758_v52 = vld [vmem:[#allocation8 + $0x18] sm:$0xff]  }
 0x145   :  { %1834 = vmatpush1.bf16.msra.mxu0 %v3617_v53  ;;  %1998 = vmatpush1.bf16.msra.mxu1 %v3620_v54  ;;  %v3759_v53 = vld [vmem:[#allocation8 + $0x60] sm:$0xff]  }
 0x146   :  { %1835 = vmatprep.subr.bf16.mxu0 %v3625_v55  ;;  %1999 = vmatprep.subr.bf16.mxu1 %v3628_v56  ;;  %v3760_v54 = vld [vmem:[#allocation8 + $0x20] sm:$0xff]   ;;  %v3761_v55 = vld [vmem:[#allocation8 + $0x68] sm:$0xff]  }
 0x147   :  { %v3762_v56 = vld [vmem:[#allocation8 + $0x28] sm:$0xff]  }
 0x149   :  { %1836 = vmatpush1.bf16.msra.mxu0 %v3623_v57  ;;  %2000 = vmatpush1.bf16.msra.mxu1 %v3626_v58  ;;  %v362_v57 = vlaneseq }
 0x14a   :  { %1837 = vmatprep.subr.bf16.mxu0 %v3631_v59  ;;  %2001 = vmatprep.subr.bf16.mxu1 %v3634_v60  ;;  %v4076_v60 = vld [vmem:[%s4119_s2] sm:$0xf] }
 0x14b   :  { %v4070_v58 = vshrl.u32 %v362_v57, 7 }
 0x14d   :  { %1838 = vmatpush1.bf16.msra.mxu0 %v3629_v61  ;;  %2002 = vmatpush1.bf16.msra.mxu1 %v3632_v62  ;;  %v364_v59 = vsub.s32 0, %v4070_v58  ;;  %v368_v61 = vsub.s32 1, %v4070_v58  ;;  %v376_v62 = vsub.s32 3, %v4070_v58 }
 0x14e   :  { %1839 = vmatprep.subr.bf16.mxu0 %v3637_v63  ;;  %2003 = vmatprep.subr.bf16.mxu1 %v3640_v0 }
 0x14f   :  { %v365_v63 = vrot.slane %v4076_v60, %v364_v59  ;;  %v369_v0 = vrot.slane %v4076_v60, %v368_v61 }
 0x151   :  { %1840 = vmatpush1.bf16.msra.mxu0 %v3635_v1  ;;  %2004 = vmatpush1.bf16.msra.mxu1 %v3638_v2  ;;  %v377_v1 = vrot.slane %v4076_v60, %v376_v62 }
 0x152   :  { %1841 = vmatprep.subr.bf16.mxu0 %v3643_v3  ;;  %2005 = vmatprep.subr.bf16.mxu1 %v3646_v4 }
 0x155   :  { %1842 = vmatpush1.bf16.msra.mxu0 %v3641_v5  ;;  %2006 = vmatpush1.bf16.msra.mxu1 %v3644_v6 }
 0x156   :  { %1843 = vmatprep.subr.bf16.mxu0 %v3649_v7  ;;  %2007 = vmatprep.subr.bf16.mxu1 %v3652_v8 }
 0x159   :  { %1844 = vmatpush1.bf16.msra.mxu0 %v3647_v9  ;;  %2008 = vmatpush1.bf16.msra.mxu1 %v3650_v10 }
 0x15a   :  { %2418 = vmatprep.subr.bf16.mxu0 %v3657_v12  ;;  %3164 = vmatprep.subr.bf16.mxu1 %v3751_v45  ;;  %v3745_v45 = vld [vmem:[#allocation7 + $0x1e0] ss:$8 sps:$4 sm:$0xff]  }
 0x15c   :  { %1846 = vmatmul.mubr.bf16.vlgmr.msra.gmra.mrb[0].mxu0 %v2816_v13  ;;  %2010 = vmatmul.mubr.bf16.vlgmr.msra.gmra.mrb[0].mxu1 %v2816_v13 }
 0x15d   :  { %2419 = vmatpush1.bf16.msra.mxu0 %v3655_v14  ;;  %3165 = vmatpush3.bf16.msra.mxu1 %v3752_v46 }
 0x15e   :  { %2420 = vmatprep.subr.bf16.mxu0 %v3660_v16  ;;  %3166 = vmatprep.subr.bf16.mxu1 %v3753_v47  ;;  %v3703_v16 = vld [vmem:[#allocation7 + $0x100] ss:$8 sps:$4 sm:$0xff]   ;;  %v3750_v47 = vld [vmem:[#allocation7 + $0x1f4] ss:$8 sps:$4 sm:$0xff]  }
 0x161   :  { %2421 = vmatpush1.bf16.msra.mxu0 %v3658_v17  ;;  %3167 = vmatpush3.bf16.msra.mxu1 %v3754_v48  ;;  %v3748_v48 = vld [vmem:[#allocation7 + $0x1f0] ss:$8 sps:$4 sm:$0xff]  }
 0x162   :  { %2422 = vmatprep.subr.bf16.mxu0 %v3663_v18  ;;  %3168 = vmatprep.subr.bf16.mxu1 %v3755_v49  ;;  %v3708_v18 = vld [vmem:[#allocation7 + $0x114] ss:$8 sps:$4 sm:$0xff]  }
 0x165   :  { %2423 = vmatpush1.bf16.msra.mxu0 %v3661_v19  ;;  %3169 = vmatpush3.bf16.msra.mxu1 %v3756_v50 }
 0x166   :  { %2424 = vmatprep.subr.bf16.mxu0 %v3666_v20  ;;  %3170 = vmatprep.subr.bf16.mxu1 %v3757_v51  ;;  %v3706_v20 = vld [vmem:[#allocation7 + $0x110] ss:$8 sps:$4 sm:$0xff]  }
 0x167   :  { %v3763_v51 = vld [vmem:[#allocation8 + $0x70] sm:$0xff]  }
 0x169   :  { %2425 = vmatpush1.bf16.msra.mxu0 %v3664_v21  ;;  %3171 = vmatpush3.bf16.msra.mxu1 %v3758_v52  ;;  %v3711_v21 = vld [vmem:[#allocation7 + $0x124] ss:$8 sps:$4 sm:$0xff]   ;;  %v3764_v52 = vld [vmem:[#allocation8 + $0x30] sm:$0xff]  }
 0x16a   :  { %2426 = vmatprep.subr.bf16.mxu0 %v3669_v11  ;;  %3172 = vmatprep.subr.bf16.mxu1 %v3759_v53  ;;  %v3709_v11 = vld [vmem:[#allocation7 + $0x120] ss:$8 sps:$4 sm:$0xff]   ;;  %v3765_v53 = vld [vmem:[#allocation8 + $0x78] sm:$0xff]  }
 0x16d   :  { %2427 = vmatpush1.bf16.msra.mxu0 %v3667_v15  ;;  %3173 = vmatpush3.bf16.msra.mxu1 %v3760_v54  ;;  %v3714_v15 = vld [vmem:[#allocation7 + $0x134] ss:$8 sps:$4 sm:$0xff]  }
 0x16e   :  { %2428 = vmatprep.subr.bf16.mxu0 %v3672_v22  ;;  %3174 = vmatprep.subr.bf16.mxu1 %v3761_v55  ;;  %v3712_v22 = vld [vmem:[#allocation7 + $0x130] ss:$8 sps:$4 sm:$0xff]   ;;  %v3926_v55 = vmov 0.0  }
 0x16f   :  { %v3766_v54 = vld [vmem:[#allocation8 + $0x38] sm:$0xff]  }
 0x171   :  { %2429 = vmatpush1.bf16.msra.mxu0 %v3670_v23  ;;  %3175 = vmatpush3.bf16.msra.mxu1 %v3762_v56  ;;  %v3717_v23 = vld [vmem:[#allocation7 + $0x144] ss:$8 sps:$4 sm:$0xff]   ;;  %v2086_v56 = vld [vmem:[%s4121_s4] sm:$0x3] }
 0x172   :  { %2430 = vmatprep.subr.bf16.mxu0 %v3675_v24  ;;  %v3715_v24 = vld [vmem:[#allocation7 + $0x140] ss:$8 sps:$4 sm:$0xff]   ;;  %3176 = vmatprep.subr.bf16.mxu1 %v3763_v51  ;;  %v2091_v57 = vrot.slane %v2086_v56, %v364_v59  ;;  %v3769_v59 = vld [vmem:[#allocation10 + $0x10] sm:$0xff]  }
 0x175   :  { %2431 = vmatpush1.bf16.msra.mxu0 %v3673_v25  ;;  %v3720_v25 = vld [vmem:[#allocation7 + $0x154] ss:$8 sps:$4 sm:$0xff]   ;;  %3177 = vmatpush3.bf16.msra.mxu1 %v3764_v52 }
 0x176   :  { %2432 = vmatprep.subr.bf16.mxu0 %v3678_v26  ;;  %v3718_v26 = vld [vmem:[#allocation7 + $0x150] ss:$8 sps:$4 sm:$0xff]   ;;  %3178 = vmatprep.subr.bf16.mxu1 %v3765_v53 }
 0x179   :  { %2433 = vmatpush1.bf16.msra.mxu0 %v3676_v27  ;;  %v3723_v27 = vld [vmem:[#allocation7 + $0x164] ss:$8 sps:$4 sm:$0xff]   ;;  %3179 = vmatpush3.bf16.msra.mxu1 %v3766_v54 }
 0x17a   :  { %2434 = vmatprep.subr.bf16.mxu0 %v3681_v28  ;;  %v3721_v28 = vld [vmem:[#allocation7 + $0x160] ss:$8 sps:$4 sm:$0xff]   ;;  %3195 = vmatprep.subr.bf16.mxu1 %v3926_v55 }
 0x17d   :  { %2435 = vmatpush1.bf16.msra.mxu0 %v3679_v29  ;;  %v3726_v29 = vld [vmem:[#allocation7 + $0x174] ss:$8 sps:$4 sm:$0xff]  }
 0x17e   :  { %2436 = vmatprep.subr.bf16.mxu0 %v3684_v30  ;;  %v3724_v30 = vld [vmem:[#allocation7 + $0x170] ss:$8 sps:$4 sm:$0xff]  }
 0x181   :  { %2437 = vmatpush1.bf16.msra.mxu0 %v3682_v31  ;;  %v3729_v31 = vld [vmem:[#allocation7 + $0x184] ss:$8 sps:$4 sm:$0xff]  }
 0x182   :  { %2438 = vmatprep.subr.bf16.mxu0 %v3687_v32  ;;  %v3727_v32 = vld [vmem:[#allocation7 + $0x180] ss:$8 sps:$4 sm:$0xff]  }
 0x185   :  { %2439 = vmatpush1.bf16.msra.mxu0 %v3685_v33  ;;  %v3732_v33 = vld [vmem:[#allocation7 + $0x194] ss:$8 sps:$4 sm:$0xff]  }
 0x186   :  { %2440 = vmatprep.subr.bf16.mxu0 %v3690_v34  ;;  %v3730_v34 = vld [vmem:[#allocation7 + $0x190] ss:$8 sps:$4 sm:$0xff]  }
 0x189   :  { %2441 = vmatpush1.bf16.msra.mxu0 %v3688_v35  ;;  %v3735_v35 = vld [vmem:[#allocation7 + $0x1a4] ss:$8 sps:$4 sm:$0xff]  }
 0x18a   :  { %2442 = vmatprep.subr.bf16.mxu0 %v3693_v36  ;;  %v3733_v36 = vld [vmem:[#allocation7 + $0x1a0] ss:$8 sps:$4 sm:$0xff]  }
 0x18d   :  { %2443 = vmatpush1.bf16.msra.mxu0 %v3691_v37  ;;  %v3738_v37 = vld [vmem:[#allocation7 + $0x1b4] ss:$8 sps:$4 sm:$0xff]  }
 0x18e   :  { %2444 = vmatprep.subr.bf16.mxu0 %v3696_v38  ;;  %v3736_v38 = vld [vmem:[#allocation7 + $0x1b0] ss:$8 sps:$4 sm:$0xff]  }
 0x191   :  { %2445 = vmatpush1.bf16.msra.mxu0 %v3694_v39  ;;  %v3741_v39 = vld [vmem:[#allocation7 + $0x1c4] ss:$8 sps:$4 sm:$0xff]  }
 0x192   :  { %2446 = vmatprep.subr.bf16.mxu0 %v3699_v40  ;;  %v3739_v40 = vld [vmem:[#allocation7 + $0x1c0] ss:$8 sps:$4 sm:$0xff]  }
 0x195   :  { %2447 = vmatpush1.bf16.msra.mxu0 %v3697_v41  ;;  %v3744_v41 = vld [vmem:[#allocation7 + $0x1d4] ss:$8 sps:$4 sm:$0xff]  }
 0x196   :  { %2448 = vmatprep.subr.bf16.mxu0 %v3702_v42  ;;  %v3742_v42 = vld [vmem:[#allocation7 + $0x1d0] ss:$8 sps:$4 sm:$0xff]  }
 0x199   :  { %2449 = vmatpush1.bf16.msra.mxu0 %v3700_v43  ;;  %v372_v43 = vsub.s32 2, %v4070_v58  ;;  %v3770_v58 = vld [vmem:[#allocation10 + $0x18] sm:$0xff]  }
 0x19a   :  { %2459 = vmatprep.subr.bf16.mxu0 %v3705_v44  ;;  %v3747_v44 = vld [vmem:[#allocation7 + $0x1e4] ss:$8 sps:$4 sm:$0xff]  }
 0x19b   :  { %v373_v46 = vrot.slane %v4076_v60, %v372_v43  ;;  %v2095_v60 = vrot.slane %v2086_v56, %v368_v61  ;;  %v3771_v61 = vld [vmem:[#allocation10 + $0x20] sm:$0xff]  }
 0x22f   :  { %v1847_v2 = vpop.f32.mrb[0].mxu0  ;;  %v4087_v3 = vpop.f32.mrb[0].mxu1 }
 0x230   :  { %v3215_v4 = vadd.f32 %v1847_v2, %v365_v63  ;;  %v1849_v5 = vpop.f32.mrb[1].mxu0  ;;  %v2013_v6 = vpop.f32.mrb[1].mxu1  ;;  %v3217_v49 = vadd.f32 %v4087_v3, %v373_v46 }
 0x231   :  { %v3216_v7 = vadd.f32 %v1849_v5, %v369_v0  ;;  %v3218_v8 = vadd.f32 %v2013_v6, %v377_v1  ;;  %v1851_v9 = vpop.f32.mrb[2].mxu0  ;;  %v2015_v10 = vpop.f32.mrb[2].mxu1 }
 0x232   :  { %v1852_v12 = vpop.f32.mrb[3].mxu0  ;;  %v2016_v13 = vpop.f32.mrb[3].mxu1  ;;  %v2018_v17 = vpack.c.bf16 %v3215_v4, %v3215_v4  ;;  %v2020_v50 = vpack.c.bf16 %v3217_v49, %v3217_v49  ;;  %v3768_v9 = vld [vmem:[#allocation10 + $0x8] sm:$0xff]  }
 0x233   :  { %v2019_v14 = vpack.c.bf16 %v3216_v7, %v3216_v7  ;;  %v2021_v19 = vpack.c.bf16 %v3218_v8, %v3218_v8  ;;  %v3767_v7 = vld [vmem:[#allocation10] sm:$0xff]   ;;  %v3772_v10 = vld [vmem:[#allocation10 + $0x28] sm:$0xff]   ;;  %v3773_v12 = vld [vmem:[#allocation10 + $0x30] sm:$0xff]  }
 0x234   :  { %v3774_v13 = vld [vmem:[#allocation10 + $0x38] sm:$0xff]  }
 0x235   :  { %2450 = vmatprep.mubr.bf16.mxu0 %v2019_v14 }
 0x236   :  { %2451 = vmatmul.mubr.bf16.vlgmr.msra.gmra.mrb[4].mxu0 %v2018_v17 }
 0x237   :  { %2460 = vmatpush1.bf16.msra.mxu0 %v3703_v16  ;;  %2491 = vmatprep.mubr.bf16.mxu0 %v2021_v19  ;;  %v3138_v16 = vld [vmem:[%s4123_s6] ss:$0 sm:$0xff]  ;;  %s3885_s6 = scalar_lea.vmem %s2800_s13, 128 }
 0x238   :  { %2461 = vmatprep.subr.bf16.mxu0 %v3708_v18  ;;  %p3886_p12 = scmp.ne.s32.totalorder %s2800_s13, %s3885_s6  ;;  %p3891_p0 = scmp.lt.s32.totalorder %s3885_s6, %s3885_s6 }
 0x23a   :  { %p3892_p1 = por %p3891_p0, %p3890_p13 }
 0x23b   :  { %2462 = vmatpush1.bf16.msra.mxu0 %v3706_v20 }
 0x23c   :  { %2463 = vmatprep.subr.bf16.mxu0 %v3711_v21  ;;  %p3893_p2 = pnand %p3892_p1, %p3886_p12 }
 0x23f   :  { %2464 = vmatpush1.bf16.msra.mxu0 %v3709_v11 }
 0x240   :  { %2465 = vmatprep.subr.bf16.mxu0 %v3714_v15 }
 0x243   :  { %2466 = vmatpush1.bf16.msra.mxu0 %v3712_v22  ;;  %v3155_v22 = vld [vmem:[%s4125_s8] ss:$0 sm:$0xff] }
 0x244   :  { %2467 = vmatprep.subr.bf16.mxu0 %v3717_v23 }
 0x247   :  { %2468 = vmatpush1.bf16.msra.mxu0 %v3715_v24 }
 0x248   :  { %2469 = vmatprep.subr.bf16.mxu0 %v3720_v25 }
 0x24b   :  { %2470 = vmatpush1.bf16.msra.mxu0 %v3718_v26 }
 0x24c   :  { %2471 = vmatprep.subr.bf16.mxu0 %v3723_v27 }
 0x24f   :  { %2472 = vmatpush1.bf16.msra.mxu0 %v3721_v28 }
 0x250   :  { %2473 = vmatprep.subr.bf16.mxu0 %v3726_v29 }
 0x253   :  { %2474 = vmatpush1.bf16.msra.mxu0 %v3724_v30 }
 0x254   :  { %2475 = vmatprep.subr.bf16.mxu0 %v3729_v31 }
 0x257   :  { %2476 = vmatpush1.bf16.msra.mxu0 %v3727_v32 }
 0x258   :  { %2477 = vmatprep.subr.bf16.mxu0 %v3732_v33 }
 0x25b   :  { %2478 = vmatpush1.bf16.msra.mxu0 %v3730_v34 }
 0x25c   :  { %2479 = vmatprep.subr.bf16.mxu0 %v3735_v35 }
 0x25f   :  { %2480 = vmatpush1.bf16.msra.mxu0 %v3733_v36 }
 0x260   :  { %2481 = vmatprep.subr.bf16.mxu0 %v3738_v37 }
 0x263   :  { %2482 = vmatpush1.bf16.msra.mxu0 %v3736_v38 }
 0x264   :  { %2483 = vmatprep.subr.bf16.mxu0 %v3741_v39 }
 0x267   :  { %2484 = vmatpush1.bf16.msra.mxu0 %v3739_v40 }
 0x268   :  { %2485 = vmatprep.subr.bf16.mxu0 %v3744_v41 }
 0x26b   :  { %2486 = vmatpush1.bf16.msra.mxu0 %v3742_v42 }
 0x26c   :  { %2487 = vmatprep.subr.bf16.mxu0 %v3747_v44 }
 0x26f   :  { %2488 = vmatpush1.bf16.msra.mxu0 %v3745_v45 }
 0x270   :  { %2489 = vmatprep.subr.bf16.mxu0 %v3750_v47 }
 0x273   :  { %2490 = vmatpush1.bf16.msra.mxu0 %v3748_v48 }
 0x276   :  { %2492 = vmatmul.mubr.bf16.vlgmr.msra.gmra.mrb[4].mxu0 %v2020_v50 }
 0x349   :  { %v2493_v62 = vpop.f32.mrb[4].mxu0 }
 0x34a   :  { %v3219_v63 = vadd.f32 %v2493_v62, %v2091_v57  ;;  %v2495_v0 = vpop.f32.mrb[5].mxu0 }
 0x34b   :  { %v3220_v1 = vadd.f32 %v2495_v0, %v2095_v60  ;;  %v2497_v2 = vpop.f32.mrb[6].mxu0 }
 0x34c   :  { %v2500_v3 = vmax.f32 %v3219_v63, 0.0  ;;  %v2498_v4 = vpop.f32.mrb[7].mxu0 }
 0x34d   :  { %v2501_v5 = vmax.f32 %v3220_v1, 0.0 }
 0x34e   :  { %v2502_v8 = vpack.c.bf16 %v2500_v3, %v2500_v3 }
 0x34f   :  { %v2503_v6 = vpack.c.bf16 %v2501_v5, %v2501_v5 }
 0x351   :  { %2671 = vmatprep.mubr.bf16.mxu1 %v2503_v6 }
 0x352   :  { %2672 = vmatmul.mubr.bf16.vlgmr.msra.gmra.mrb[4].mxu1 %v2502_v8 }
 0x353   :  { %3196 = vmatpush3.bf16.msra.mxu1 %v3767_v7  ;;  %3211 = vmatprep.mubr.msk.bf16.mxu1 %vm3927_vm0, %v3926_v55 }
 0x354   :  { %3197 = vmatprep.subr.bf16.mxu1 %v3926_v55 }
 0x357   :  { %3198 = vmatpush3.bf16.msra.mxu1 %v3768_v9 }
 0x358   :  { %3199 = vmatprep.subr.bf16.mxu1 %v3926_v55 }
 0x35b   :  { %3200 = vmatpush3.bf16.msra.mxu1 %v3769_v59 }
 0x35c   :  { %3201 = vmatprep.subr.bf16.mxu1 %v3926_v55 }
 0x35f   :  { %3202 = vmatpush3.bf16.msra.mxu1 %v3770_v58 }
 0x360   :  { %3203 = vmatprep.subr.bf16.mxu1 %v3926_v55 }
 0x363   :  { %3204 = vmatpush3.bf16.msra.mxu1 %v3771_v61 }
 0x364   :  { %3205 = vmatprep.subr.bf16.mxu1 %v3926_v55 }
 0x367   :  { %3206 = vmatpush3.bf16.msra.mxu1 %v3772_v10 }
 0x368   :  { %3207 = vmatprep.subr.bf16.mxu1 %v3926_v55 }
 0x36b   :  { %3208 = vmatpush3.bf16.msra.mxu1 %v3773_v12 }
 0x36c   :  { %3209 = vmatprep.subr.bf16.mxu1 %v3926_v55 }
 0x36f   :  { %3210 = vmatpush3.bf16.msra.mxu1 %v3774_v13 }
 0x425   :  { %v3180_v14 = vpop.f32.mrb[4].mxu1 }
 0x426   :  { %v3181_v17 = vpop.f32.mrb[5].mxu1 }
 0x427   :  { %v3182_v18 = vadd.f32 %v3181_v17, %v3180_v14  ;;  %v3183_v19 = vpop.f32.mrb[6].mxu1 }
 0x428   :  { %v3184_v20 = vpop.f32.mrb[7].mxu1 }
 0x429   :  { %v2674_v21 = vadd.f32 %v3182_v18, %v3138_v16 }
 0x42b   :  { %v2679_v11 = vmax.f32 %v2674_v21, 0.0 }
 0x42d   :  { %v2680_v15 = vpack.c.bf16 %v2679_v11, %v2679_v11 }
 0x42f   :  { %3212 = vmatmul.mubr.bf16.vlgmr.msra.gmra.mrb[8].mxu1 %v2680_v15 }
 0x502   :  { %v2786_v23 = vpop.f32.mrb[8].mxu1 }
 0x503   :  { %v2787_v24 = vadd.f32 %v3155_v22, %v2786_v23  ;;  %v3213_v25 = vpop.f32.mrb[9].mxu1 }
 0x504   :  { %v2789_v26 = vpop.f32.mrb[10].mxu1 }
 0x505   :  { %2792 = vst [vmem:[#allocation11] sm:$0xff] %v2787_v24  ;;  %v3214_v27 = vpop.f32.mrb[11].mxu1 }
 0x506   :  { %3896 = shalt.err (!%p3893_p2)
}
 0x507   :  { %s3897_s8 = scalar_lea.hbm %s4126_s9, 128 }
 0x508   :  { %p3898_p3 = scmp.ne.s32.totalorder %s4126_s9, %s3897_s8  ;;  %p3901_p4 = scmp.lt.u32.totalorder %s3897_s8, %s4126_s9 }
 0x50a   :  { %p3903_p5 = pnand %p3901_p4, %p3898_p3 }
 0x50c   :  { %3906 = shalt.err (!%p3903_p5)
}
 0x50d   :  { %2802 = dma.vmem_to_hbm [thread:$0]  %s2800_s13, 128, %s4126_s9, [#allocation4]  }
 0x50e   :  { %3913 = dma.done.wait [#allocation4], 128  }
 0x50f   :  { %3914 = vsyncadd [#allocation4], 4294967168 }
 0x510   :  { %2806 = vsyncpa [#allocation3], 1 }
 0x511   :  { %2807 = vsyncpa [#allocation6], 1 }
 0x512   :  { %2808 = vsyncpa [#allocation9], 1 }
 0x513   :  { %2809 = vsyncpa [#allocation4], 1 }

</bundles_post_ra>
